<compile_context>
chip_gen: v7x
topology: tpu7x:2x2x1
jax: 0.10.0
libtpu: 0.0.40
codegen_flags: <defaults>
</compile_context>

<pallas_src>
import jax
import jax.numpy as jnp
from jax.experimental import pallas as pl
from jax.experimental.pallas import tpu as pltpu

IN_FEATURES = 28 * 28          # 784
H1 = 512
H2 = 256
OUT = 1


# ------------------------------ Pallas kernel -------------------------------
def _discriminator_kernel(x_ref, w1_ref, b1_ref, w2_ref, b2_ref,
                          w3_ref, b3_ref, o_ref):
    # relu(fc1): (tb, 784) @ (784, 512)   -- MXU, f32 accumulate
    h = jnp.maximum(
        jnp.dot(x_ref[...], w1_ref[...], preferred_element_type=jnp.float32)
        + b1_ref[...], 0.0)
    # relu(fc2): (tb, 512) @ (512, 256)
    h = jnp.maximum(
        jnp.dot(h, w2_ref[...], preferred_element_type=jnp.float32)
        + b2_ref[...], 0.0)
    # fc3 (256 -> 1, no relu): elementwise mul (VPU) + lane reduce (XLU)
    # instead of a 127/128-zero padded MXU column.
    o_ref[...] = jnp.sum(h * w3_ref[...], axis=-1, keepdims=True) + b3_ref[...]


# ----------------------------- Python wrapper --------------------------------
def discriminator_forward(x, params):
    """x: (B, ...) with prod(...) == 784  ->  (B, 1) logits."""
    B = x.shape[0]
    xf = x.reshape(B, -1).astype(jnp.float32)
    assert xf.shape[1] == IN_FEATURES

    # Batch tile: multiple of 8 (sublane), capped at 512 (fills the 256-row MXU
    # on v6e/v7x, x tile ~1.6 MiB).  cdiv(B, 2) target keeps >= 2 grid blocks
    # whenever B > 8 so both v7x TensorCores get work on the "parallel" axis.
    tb = min(512, max(8, ((-(-B // 2) + 7) // 8) * 8))
    grid = (pl.cdiv(B, tb),)
    # NOTE: the edge block may contain rows beyond B (undefined data); they are
    # row-independent through the MLP and clipped on output writeback.

    w1, b1 = params["w1"], params["b1"]
    w2, b2 = params["w2"], params["b2"]
    w3_row, b3 = params["w3_row"], params["b3"]

    flops = 2 * B * (IN_FEATURES * H1 + H1 * H2 + H2 * OUT)
    weight_bytes = 4 * (IN_FEATURES * H1 + H1 + H1 * H2 + H2 + H2 * OUT + OUT)
    bytes_accessed = 4 * B * (IN_FEATURES + OUT) + weight_bytes

    out = pl.pallas_call(
        _discriminator_kernel,
        out_shape=jax.ShapeDtypeStruct((B, OUT), jnp.float32),
        grid=grid,
        in_specs=[
            pl.BlockSpec((tb, IN_FEATURES), lambda i: (i, 0)),   # x tile (full 784 lanes)
            pl.BlockSpec((IN_FEATURES, H1), lambda i: (0, 0)),   # fc1 weight (resident)
            pl.BlockSpec((1, H1), lambda i: (0, 0)),             # fc1 bias
            pl.BlockSpec((H1, H2), lambda i: (0, 0)),            # fc2 weight (resident)
            pl.BlockSpec((1, H2), lambda i: (0, 0)),             # fc2 bias
            pl.BlockSpec((1, H2), lambda i: (0, 0)),             # fc3 weight as a (1,256) row
            pl.BlockSpec((1, 1), lambda i: (0, 0)),              # fc3 bias scalar
        ],
        out_specs=pl.BlockSpec((tb, OUT), lambda i: (i, 0)),
        compiler_params=pltpu.CompilerParams(
            dimension_semantics=("parallel",)),
        cost_estimate=pl.CostEstimate(
            flops=flops, bytes_accessed=bytes_accessed, transcendentals=0),
    )(xf, w1, b1, w2, b2, w3_row, b3)

    return out


# ------------------------------- parameters ----------------------------------
def make_params(key):
    """torch.nn.Linear-style uniform(-1/sqrt(fan_in), 1/sqrt(fan_in)) init."""
    def linear_init(k, fan_in, fan_out):
        kw, kb = jax.random.split(k)
        bound = 1.0 / float(fan_in) ** 0.5
        w = jax.random.uniform(kw, (fan_in, fan_out), jnp.float32, -bound, bound)
        b = jax.random.uniform(kb, (1, fan_out), jnp.float32, -bound, bound)
        return w, b

    k1, k2, k3 = jax.random.split(key, 3)
    w1, b1 = linear_init(k1, IN_FEATURES, H1)
    w2, b2 = linear_init(k2, H1, H2)
    w3, b3 = linear_init(k3, H2, OUT)

    params = dict(
        w1=w1, b1=b1, w2=w2, b2=b2,
        w3_row=w3.reshape(1, H2),     # (1, 256) lane row for the in-kernel reduce
        b3=b3.reshape(1, 1),
    )
    raw = (w1, b1, w2, b2, w3, b3)
    return params, raw


# ---------------------------------- main --------------------------------------
if __name__ == "__main__":
    key = jax.random.PRNGKey(0)
    k_x, k_p = jax.random.split(key)

    x = jax.random.uniform(k_x, (2, 1, 28, 28), jnp.float32)   # batch=2 MNIST-shaped input
    params, raw = make_params(k_p)

    out = jax.block_until_ready(discriminator_forward(x, params))
    assert out.shape == (2, 1)
    assert bool(jnp.all(jnp.isfinite(out)))

    # pure-JAX reference check (same math as torch Discriminator.forward).
    # Tolerance accounts for default-precision bf16 MXU passes on TPU.
    w1, b1, w2, b2, w3, b3 = raw
    xf = x.reshape(2, -1)
    h = jnp.maximum(xf @ w1 + b1, 0.0)
    h = jnp.maximum(h @ w2 + b2, 0.0)
    ref = h @ w3 + b3
    assert bool(jnp.allclose(out, ref, atol=2e-3, rtol=2e-3))

    print("KERNEL_OK")
</pallas_src>

<mosaic_0001>
module attributes {stable_mosaic.version = 11 : i64} {
  func.func @_discriminator_kernel(%arg0: i32, %arg1: memref<8x784xf32, #tpu.memory_space<vmem>>, %arg2: memref<784x512xf32, #tpu.memory_space<vmem>>, %arg3: memref<1x512xf32, #tpu.memory_space<vmem>>, %arg4: memref<512x256xf32, #tpu.memory_space<vmem>>, %arg5: memref<1x256xf32, #tpu.memory_space<vmem>>, %arg6: memref<1x256xf32, #tpu.memory_space<vmem>>, %arg7: memref<1x1xf32, #tpu.memory_space<vmem>>, %arg8: memref<8x1xf32, #tpu.memory_space<vmem>>) attributes {dimension_semantics = [#tpu.dimension_semantics<parallel>], iteration_bounds = array<i64: 1>, scalar_prefetch = 0 : i64, scratch_operands = 0 : i64, tpu.core_type = #tpu.core_type<tc>, window_params = [{transform_indices = @transform_0, window_bounds = array<i64: 8, 784>}, {pipeline_mode = #tpu.pipeline_mode<synchronous>, transform_indices = @transform_1, window_bounds = array<i64: 784, 512>}, {pipeline_mode = #tpu.pipeline_mode<synchronous>, transform_indices = @transform_2, window_bounds = array<i64: 1, 512>}, {pipeline_mode = #tpu.pipeline_mode<synchronous>, transform_indices = @transform_3, window_bounds = array<i64: 512, 256>}, {pipeline_mode = #tpu.pipeline_mode<synchronous>, transform_indices = @transform_4, window_bounds = array<i64: 1, 256>}, {pipeline_mode = #tpu.pipeline_mode<synchronous>, transform_indices = @transform_5, window_bounds = array<i64: 1, 256>}, {pipeline_mode = #tpu.pipeline_mode<synchronous>, transform_indices = @transform_6, window_bounds = array<i64: 1, 1>}, {transform_indices = @transform_7, window_bounds = array<i64: 8, 1>}]} {
    %c0 = arith.constant 0 : index
    %c0_0 = arith.constant 0 : index
    %0 = vector.load %arg1[%c0, %c0_0] : memref<8x784xf32, #tpu.memory_space<vmem>>, vector<8x784xf32>
    %c0_1 = arith.constant 0 : index
    %c0_2 = arith.constant 0 : index
    %1 = vector.load %arg2[%c0_1, %c0_2] : memref<784x512xf32, #tpu.memory_space<vmem>>, vector<784x512xf32>
    %cst = arith.constant dense<0.000000e+00> : vector<8x512xf32>
    %2 = tpu.matmul %0, %1, %cst {dimension_numbers = #tpu.dot_dimension_numbers<[1], [0], [0], [1], [0, 0, 1, 1], [], []>} : vector<8x784xf32>, vector<784x512xf32>, vector<8x512xf32> -> vector<8x512xf32>
    %c0_3 = arith.constant 0 : index
    %c0_4 = arith.constant 0 : index
    %3 = vector.load %arg3[%c0_3, %c0_4] : memref<1x512xf32, #tpu.memory_space<vmem>>, vector<1x512xf32>
    %4 = vector.broadcast %3 : vector<1x512xf32> to vector<8x512xf32>
    %5 = arith.addf %2, %4 : vector<8x512xf32>
    %cst_5 = arith.constant 0.000000e+00 : f32
    %6 = vector.broadcast %cst_5 : f32 to vector<8x512xf32>
    %7 = arith.maximumf %5, %6 : vector<8x512xf32>
    %c0_6 = arith.constant 0 : index
    %c0_7 = arith.constant 0 : index
    %8 = vector.load %arg4[%c0_6, %c0_7] : memref<512x256xf32, #tpu.memory_space<vmem>>, vector<512x256xf32>
    %cst_8 = arith.constant dense<0.000000e+00> : vector<8x256xf32>
    %9 = tpu.matmul %7, %8, %cst_8 {dimension_numbers = #tpu.dot_dimension_numbers<[1], [0], [0], [1], [0, 0, 1, 1], [], []>} : vector<8x512xf32>, vector<512x256xf32>, vector<8x256xf32> -> vector<8x256xf32>
    %c0_9 = arith.constant 0 : index
    %c0_10 = arith.constant 0 : index
    %10 = vector.load %arg5[%c0_9, %c0_10] : memref<1x256xf32, #tpu.memory_space<vmem>>, vector<1x256xf32>
    %11 = vector.broadcast %10 : vector<1x256xf32> to vector<8x256xf32>
    %12 = arith.addf %9, %11 : vector<8x256xf32>
    %cst_11 = arith.constant 0.000000e+00 : f32
    %13 = vector.broadcast %cst_11 : f32 to vector<8x256xf32>
    %14 = arith.maximumf %12, %13 : vector<8x256xf32>
    %c0_12 = arith.constant 0 : index
    %c0_13 = arith.constant 0 : index
    %15 = vector.load %arg6[%c0_12, %c0_13] : memref<1x256xf32, #tpu.memory_space<vmem>>, vector<1x256xf32>
    %16 = vector.broadcast %15 : vector<1x256xf32> to vector<8x256xf32>
    %17 = arith.mulf %14, %16 : vector<8x256xf32>
    %cst_14 = arith.constant dense<0.000000e+00> : vector<8xf32>
    %18 = vector.multi_reduction <add>, %17, %cst_14 [1] : vector<8x256xf32> to vector<8xf32>
    %19 = vector.shape_cast %18 : vector<8xf32> to vector<8x1xf32>
    %c0_15 = arith.constant 0 : index
    %c0_16 = arith.constant 0 : index
    %20 = vector.load %arg7[%c0_15, %c0_16] : memref<1x1xf32, #tpu.memory_space<vmem>>, vector<1x1xf32>
    %21 = vector.broadcast %20 : vector<1x1xf32> to vector<8x1xf32>
    %22 = arith.addf %19, %21 : vector<8x1xf32>
    %c0_17 = arith.constant 0 : index
    %c0_18 = arith.constant 0 : index
    %23 = vector.load %arg8[%c0_17, %c0_18] : memref<8x1xf32, #tpu.memory_space<vmem>>, vector<8x1xf32>
    tpu.vector_store %arg8[%c0_17, %c0_18], %22 {strides = array<i32>} : memref<8x1xf32, #tpu.memory_space<vmem>>, vector<8x1xf32>,
    return
  }
  func.func @transform_0(%arg0: i32) -> (i32, i32) {
    %c0_i32 = arith.constant 0 : i32
    %c0_i32_0 = arith.constant 0 : i32
    return %arg0, %c0_i32 : i32, i32
  }
  func.func @transform_1(%arg0: i32) -> (i32, i32) {
    %c0_i32 = arith.constant 0 : i32
    %c0_i32_0 = arith.constant 0 : i32
    %c0_i32_1 = arith.constant 0 : i32
    return %c0_i32, %c0_i32_0 : i32, i32
  }
  func.func @transform_2(%arg0: i32) -> (i32, i32) {
    %c0_i32 = arith.constant 0 : i32
    %c0_i32_0 = arith.constant 0 : i32
    %c0_i32_1 = arith.constant 0 : i32
    return %c0_i32, %c0_i32_0 : i32, i32
  }
  func.func @transform_3(%arg0: i32) -> (i32, i32) {
    %c0_i32 = arith.constant 0 : i32
    %c0_i32_0 = arith.constant 0 : i32
    %c0_i32_1 = arith.constant 0 : i32
    return %c0_i32, %c0_i32_0 : i32, i32
  }
  func.func @transform_4(%arg0: i32) -> (i32, i32) {
    %c0_i32 = arith.constant 0 : i32
    %c0_i32_0 = arith.constant 0 : i32
    %c0_i32_1 = arith.constant 0 : i32
    return %c0_i32, %c0_i32_0 : i32, i32
  }
  func.func @transform_5(%arg0: i32) -> (i32, i32) {
    %c0_i32 = arith.constant 0 : i32
    %c0_i32_0 = arith.constant 0 : i32
    %c0_i32_1 = arith.constant 0 : i32
    return %c0_i32, %c0_i32_0 : i32, i32
  }
  func.func @transform_6(%arg0: i32) -> (i32, i32) {
    %c0_i32 = arith.constant 0 : i32
    %c0_i32_0 = arith.constant 0 : i32
    %c0_i32_1 = arith.constant 0 : i32
    return %c0_i32, %c0_i32_0 : i32, i32
  }
  func.func @transform_7(%arg0: i32) -> (i32, i32) {
    %c0_i32 = arith.constant 0 : i32
    %c0_i32_0 = arith.constant 0 : i32
    return %arg0, %c0_i32 : i32, i32
  }
}

</mosaic_0001>

<bundles_post_ra>
// kernel: tpu_custom_call.1
= control target key start
LH: loop header
LB: loop body
LE: loop exit
PB: predicated region body
PF: predicated region fallthrough
CT: control target
= control target key end

     0   :  { %s2470_s0 = inlined_call_operand.hbm [shape: f32[2,784], index: 0, kind: input, shape index: {}]   ;;  %s2471_s1 = inlined_call_operand.hbm [shape: f32[784,512], index: 1, kind: input, shape index: {}]   ;;  %s2472_s2 = inlined_call_operand.hbm [shape: f32[1,512], index: 2, kind: input, shape index: {}]   ;;  %s2473_s3 = inlined_call_operand.hbm [shape: f32[512,256], index: 3, kind: input, shape index: {}]   ;;  %s2474_s4 = inlined_call_operand.hbm [shape: f32[1,256], index: 4, kind: input, shape index: {}]   ;;  %s2475_s5 = inlined_call_operand.hbm [shape: f32[1,256], index: 5, kind: input, shape index: {}]   ;;  %s2476_s6 = inlined_call_operand.<no memory space> [shape: f32[1,1], index: 6, kind: input, shape index: {}]   ;;  %s2477_s7 = inlined_call_operand.vmem [shape: f32[2,1], index: 7, kind: output, shape index: {}]  }
   0x1   :  { %v12_v0 = vstv %s2476_s6 }
   0x2   :  { %13 = vst [vmem:[#allocation2] sm:$0x1] %v12_v0 }
   0x3   :  { %14 = vsyncpa [#allocation4], 0 }
   0x4   :  { %15 = vsyncpa [#allocation6], 0 }
   0x5   :  { %16 = vsyncpa [#allocation9], 0 }
   0x6   :  { %17 = vsyncpa [#allocation12], 0 }
   0x7   :  { %22 = vsyncadd [#allocation4], 672  ;;  %s2249_s26 = smov [#allocation5]   ;;  %s2109_s30 = scalar_lea.hbm %s2471_s1, 50176 }
   0x8   :  { %s35_s27 = sshll.u32 %s2249_s26, 4  ;;  %p2110_p0 = scmp.ne.s32.totalorder %s2471_s1, %s2109_s30  ;;  %s36_s27 = int_to_ptr.vmem [resolvable:$true] %s35_s27 }
   0x9   :  { %p2113_p1 = scmp.lt.u32.totalorder %s2109_s30, %s2471_s1 }
   0xb   :  { %p2115_p2 = pnand %p2113_p1, %p2110_p0 }
   0xd   :  { %2118 = shalt.err (!%p2115_p2)
}
   0xe   :  { %s2119_s6 = scalar_lea.vmem %s36_s27, 50176  ;;  %p2124_p4 = scmp.lt.s32.totalorder %s36_s27, %s36_s27 }
   0xf   :  { %p2120_p3 = scmp.ne.s32.totalorder %s36_s27, %s2119_s6  ;;  %p2125_p5 = scmp.lt.s32.totalorder %s2119_s6, %s2119_s6 }
  0x11   :  { %p2126_p6 = por %p2125_p5, %p2124_p4 }
  0x13   :  { %p2127_p7 = pnand %p2126_p6, %p2120_p3 }
  0x15   :  { %2130 = shalt.err (!%p2127_p7)
}
  0x16   :  { %s2250_s12 = smov 512   ;;  %s2251_s13 = smov 32  }
  0x17   :  { %41 = dma.hbm_to_vmem [thread:$0]  %s2471_s1, 50176, %s36_s27, [#allocation6], %s2250_s12, %s2250_s12, %s2251_s13  }
  0x18   :  { %s2252_s16 = smov [#allocation8]   ;;  %s2131_s20 = scalar_lea.hbm %s2473_s3, 16384 }
  0x19   :  { %s57_s17 = sshll.u32 %s2252_s16, 4  ;;  %p2132_p8 = scmp.ne.s32.totalorder %s2473_s3, %s2131_s20  ;;  %s58_s17 = int_to_ptr.vmem [resolvable:$true] %s57_s17 }
  0x1a   :  { %p2135_p9 = scmp.lt.u32.totalorder %s2131_s20, %s2473_s3 }
  0x1c   :  { %p2137_p10 = pnand %p2135_p9, %p2132_p8 }
  0x1e   :  { %2140 = shalt.err (!%p2137_p10)
}
  0x1f   :  { %s2141_s25 = scalar_lea.vmem %s58_s17, 16384  ;;  %p2146_p12 = scmp.lt.s32.totalorder %s58_s17, %s58_s17 }
  0x20   :  { %p2142_p11 = scmp.ne.s32.totalorder %s58_s17, %s2141_s25  ;;  %p2147_p13 = scmp.lt.s32.totalorder %s2141_s25, %s2141_s25 }
  0x22   :  { %p2148_p0 = por %p2147_p13, %p2146_p12 }
  0x24   :  { %p2149_p1 = pnand %p2148_p0, %p2142_p11 }
  0x26   :  { %2152 = shalt.err (!%p2149_p1)
}
  0x27   :  { %s2253_s1 = smov 256   ;;  %s2254_s26 = smov 16  }
  0x28   :  { %63 = dma.hbm_to_vmem [thread:$0]  %s2473_s3, 16384, %s58_s17, [#allocation9], %s2253_s1, %s2253_s1, %s2254_s26  }
  0x29   :  { %s2255_s29 = smov [#allocation3]   ;;  %s2153_s10 = scalar_lea.hbm %s2470_s0, 224 }
  0x2a   :  { %s23_s30 = sshll.u32 %s2255_s29, 4  ;;  %p2154_p2 = scmp.ne.s32.totalorder %s2470_s0, %s2153_s10  ;;  %s24_s30 = int_to_ptr.vmem [resolvable:$true] %s23_s30 }
  0x2b   :  { %p2157_p3 = scmp.lt.u32.totalorder %s2153_s10, %s2470_s0 }
  0x2d   :  { %p2159_p4 = pnand %p2157_p3, %p2154_p2 }
  0x2f   :  { %2162 = shalt.err (!%p2159_p4)
}
  0x30   :  { %s2163_s14 = scalar_lea.vmem %s24_s30, 224  ;;  %s2167_s3 = scalar_lea.vmem %s24_s30, 896 }
  0x31   :  { %p2164_p5 = scmp.ne.s32.totalorder %s24_s30, %s2163_s14  ;;  %p2168_p6 = scmp.lt.s32.totalorder %s24_s30, %s24_s30 }
  0x32   :  { %p2169_p7 = scmp.lt.s32.totalorder %s2167_s3, %s2163_s14 }
  0x34   :  { %p2170_p8 = por %p2169_p7, %p2168_p6 }
  0x36   :  { %p2171_p9 = pnand %p2170_p8, %p2164_p5 }
  0x38   :  { %2174 = shalt.err (!%p2171_p9)
}
  0x39   :  { %s2256_s15 = smov 224   ;;  %s2257_s16 = smov 14  }
  0x3a   :  { %29 = dma.hbm_to_vmem [thread:$0]  %s2470_s0, 224, %s24_s30, [#allocation4], %s2256_s15, %s2256_s15, %s2257_s16  }
  0x3b   :  { %s2258_s19 = smov [#allocation7]   ;;  %s2259_s21 = smov [#allocation10]  }
  0x3c   :  { %s48_s20 = sshll.u32 %s2258_s19, 4  ;;  %s70_s22 = sshll.u32 %s2259_s21, 4  ;;  %s49_s20 = int_to_ptr.vmem [resolvable:$true] %s48_s20  ;;  %s71_s22 = int_to_ptr.vmem [resolvable:$true] %s70_s22 }
  0x3d   :  { %s2175_s25 = scalar_lea.hbm %s2472_s2, 64 }
  0x3e   :  { %p2176_p10 = scmp.ne.s32.totalorder %s2472_s2, %s2175_s25  ;;  %p2179_p11 = scmp.lt.u32.totalorder %s2175_s25, %s2472_s2 }
  0x40   :  { %p2181_p12 = pnand %p2179_p11, %p2176_p10 }
  0x42   :  { %2184 = shalt.err (!%p2181_p12)
}
  0x43   :  { %s2185_s0 = scalar_lea.vmem %s49_s20, 64  ;;  %p2190_p0 = scmp.lt.s32.totalorder %s49_s20, %s49_s20 }
  0x44   :  { %p2186_p13 = scmp.ne.s32.totalorder %s49_s20, %s2185_s0  ;;  %p2191_p1 = scmp.lt.s32.totalorder %s2185_s0, %s2185_s0 }
  0x46   :  { %p2192_p2 = por %p2191_p1, %p2190_p0 }
  0x48   :  { %p2193_p3 = pnand %p2192_p2, %p2186_p13 }
  0x4a   :  { %2196 = shalt.err (!%p2193_p3)
}
  0x4b   :  { %51 = dma.hbm_to_vmem [thread:$0]  %s2472_s2, 64, %s49_s20, [#allocation6]  }
  0x4c   :  { %s2197_s10 = scalar_lea.hbm %s2474_s4, 32 }
  0x4d   :  { %p2198_p4 = scmp.ne.s32.totalorder %s2474_s4, %s2197_s10  ;;  %p2201_p5 = scmp.lt.u32.totalorder %s2197_s10, %s2474_s4 }
  0x4f   :  { %p2203_p6 = pnand %p2201_p5, %p2198_p4 }
  0x51   :  { %2206 = shalt.err (!%p2203_p6)
}
  0x52   :  { %s2207_s14 = scalar_lea.vmem %s71_s22, 32  ;;  %p2212_p8 = scmp.lt.s32.totalorder %s71_s22, %s71_s22 }
  0x53   :  { %p2208_p7 = scmp.ne.s32.totalorder %s71_s22, %s2207_s14  ;;  %p2213_p9 = scmp.lt.s32.totalorder %s2207_s14, %s2207_s14 }
  0x55   :  { %p2214_p10 = por %p2213_p9, %p2212_p8 }
  0x57   :  { %p2215_p11 = pnand %p2214_p10, %p2208_p7 }
  0x59   :  { %2218 = shalt.err (!%p2215_p11)
}
  0x5a   :  { %73 = dma.hbm_to_vmem [thread:$0]  %s2474_s4, 32, %s71_s22, [#allocation9]  }
  0x5b   :  { %s2260_s15 = smov [#allocation11]   ;;  %s2219_s19 = scalar_lea.hbm %s2475_s5, 32 }
  0x5c   :  { %s80_s16 = sshll.u32 %s2260_s15, 4  ;;  %p2220_p12 = scmp.ne.s32.totalorder %s2475_s5, %s2219_s19  ;;  %s81_s16 = int_to_ptr.vmem [resolvable:$true] %s80_s16 }
  0x5d   :  { %p2223_p13 = scmp.lt.u32.totalorder %s2219_s19, %s2475_s5 }
  0x5f   :  { %p2225_p0 = pnand %p2223_p13, %p2220_p12 }
  0x61   :  { %2228 = shalt.err (!%p2225_p0)
}
  0x62   :  { %s2229_s25 = scalar_lea.vmem %s81_s16, 32  ;;  %p2234_p2 = scmp.lt.s32.totalorder %s81_s16, %s81_s16 }
  0x63   :  { %p2230_p1 = scmp.ne.s32.totalorder %s81_s16, %s2229_s25  ;;  %p2235_p3 = scmp.lt.s32.totalorder %s2229_s25, %s2229_s25 }
  0x65   :  { %p2236_p4 = por %p2235_p3, %p2234_p2 }
  0x67   :  { %p2237_p5 = pnand %p2236_p4, %p2230_p1 }
  0x69   :  { %2240 = shalt.err (!%p2237_p5)
}
  0x6a   :  { %83 = dma.hbm_to_vmem [thread:$0]  %s2475_s5, 32, %s81_s16, [#allocation12]  }
  0x6b   :  { %2241 = dma.done.wait [#allocation4], 896  }
  0x6c   :  { %2242 = vsyncadd [#allocation4], 4294966400 }
  0x6d   :  { %2243 = dma.done.wait [#allocation6], 50240  }
  0x6e   :  { %2244 = vsyncadd [#allocation6], 4294917056 }
  0x6f   :  { %2245 = dma.done.wait [#allocation9], 16416  }
  0x70   :  { %2246 = vsyncadd [#allocation9], 4294950880 }
  0x71   :  { %2247 = dma.done.wait [#allocation12], 32  }
  0x72   :  { %2248 = vsyncadd [#allocation12], 4294967264  ;;  %v113_v1 = vld [vmem:[#allocation5 + $0x8] sm:$0xff]  ;;  %v112_v6 = vld [vmem:[#allocation5] sm:$0xff]  ;;  %vm611_vm0 = vcmask 130048   ;;  %vm1495_vm1 = vcmask 7168  }
  0x73   :  { %v117_v2 = vld [vmem:[#allocation5 + $0x28] sm:$0xff]  ;;  %v116_v7 = vld [vmem:[#allocation5 + $0x20] sm:$0xff] }
  0x74   :  { %v241_v3 = vld [vmem:[#allocation5 + $0x408] sm:$0xff]  ;;  %v1543_v4 = vpack.c.bf16 %v117_v2, %v113_v1  ;;  %v1545_v9 = vpack.c.bf16 %v116_v7, %v112_v6  ;;  %v240_v10 = vld [vmem:[#allocation5 + $0x400] sm:$0xff] }
  0x75   :  { %v245_v5 = vld [vmem:[#allocation5 + $0x428] sm:$0xff]  ;;  %v244_v11 = vld [vmem:[#allocation5 + $0x420] sm:$0xff] }
  0x76   :  { %v1607_v8 = vpack.c.bf16 %v245_v5, %v241_v3  ;;  %v121_v12 = vld [vmem:[#allocation5 + $0x48] sm:$0xff]  ;;  %1544 = vmatprep.subr.bf16.mxu1 %v1543_v4  ;;  %v1609_v13 = vpack.c.bf16 %v244_v11, %v240_v10  ;;  %v120_v19 = vld [vmem:[#allocation5 + $0x40] sm:$0xff] }
  0x77   :  { %v125_v14 = vld [vmem:[#allocation5 + $0x68] sm:$0xff]  ;;  %1546 = vmatpush1.bf16.msra.mxu1 %v1545_v9  ;;  %v124_v20 = vld [vmem:[#allocation5 + $0x60] sm:$0xff] }
  0x78   :  { %v249_v15 = vld [vmem:[#allocation5 + $0x448] sm:$0xff]  ;;  %1608 = vmatprep.subr.bf16.mxu0 %v1607_v8  ;;  %v1547_v17 = vpack.c.bf16 %v125_v14, %v121_v12  ;;  %v248_v21 = vld [vmem:[#allocation5 + $0x440] sm:$0xff]  ;;  %v1549_v22 = vpack.c.bf16 %v124_v20, %v120_v19 }
  0x79   :  { %v253_v16 = vld [vmem:[#allocation5 + $0x468] sm:$0xff]  ;;  %1610 = vmatpush1.bf16.msra.mxu0 %v1609_v13  ;;  %v252_v23 = vld [vmem:[#allocation5 + $0x460] sm:$0xff] }
  0x7a   :  { %v1611_v18 = vpack.c.bf16 %v253_v16, %v249_v15  ;;  %v129_v24 = vld [vmem:[#allocation5 + $0x88] sm:$0xff]  ;;  %1548 = vmatprep.subr.bf16.mxu1 %v1547_v17  ;;  %v1613_v26 = vpack.c.bf16 %v252_v23, %v248_v21  ;;  %v128_v30 = vld [vmem:[#allocation5 + $0x80] sm:$0xff] }
  0x7b   :  { %v133_v25 = vld [vmem:[#allocation5 + $0xa8] sm:$0xff]  ;;  %v132_v32 = vld [vmem:[#allocation5 + $0xa0] sm:$0xff]  ;;  %1550 = vmatpush1.bf16.msra.mxu1 %v1549_v22 }
  0x7c   :  { %1612 = vmatprep.subr.bf16.mxu0 %v1611_v18  ;;  %v1551_v27 = vpack.c.bf16 %v133_v25, %v129_v24  ;;  %v257_v28 = vld [vmem:[#allocation5 + $0x488] sm:$0xff]  ;;  %v256_v33 = vld [vmem:[#allocation5 + $0x480] sm:$0xff]  ;;  %v1553_v35 = vpack.c.bf16 %v132_v32, %v128_v30 }
  0x7d   :  { %v261_v29 = vld [vmem:[#allocation5 + $0x4a8] sm:$0xff]  ;;  %v260_v34 = vld [vmem:[#allocation5 + $0x4a0] sm:$0xff]  ;;  %1614 = vmatpush1.bf16.msra.mxu0 %v1613_v26 }
  0x7e   :  { %v1615_v31 = vpack.c.bf16 %v261_v29, %v257_v28  ;;  %v137_v36 = vld [vmem:[#allocation5 + $0xc8] sm:$0xff]  ;;  %1552 = vmatprep.subr.bf16.mxu1 %v1551_v27  ;;  %v1617_v39 = vpack.c.bf16 %v260_v34, %v256_v33  ;;  %v136_v42 = vld [vmem:[#allocation5 + $0xc0] sm:$0xff] }
  0x7f   :  { %v141_v37 = vld [vmem:[#allocation5 + $0xe8] sm:$0xff]  ;;  %v140_v43 = vld [vmem:[#allocation5 + $0xe0] sm:$0xff]  ;;  %1554 = vmatpush1.bf16.msra.mxu1 %v1553_v35 }
  0x80   :  { %v265_v38 = vld [vmem:[#allocation5 + $0x4c8] sm:$0xff]  ;;  %v1555_v40 = vpack.c.bf16 %v141_v37, %v137_v36  ;;  %1616 = vmatprep.subr.bf16.mxu0 %v1615_v31  ;;  %v264_v45 = vld [vmem:[#allocation5 + $0x4c0] sm:$0xff]  ;;  %v1557_v51 = vpack.c.bf16 %v140_v43, %v136_v42 }
  0x81   :  { %v269_v41 = vld [vmem:[#allocation5 + $0x4e8] sm:$0xff]  ;;  %v268_v46 = vld [vmem:[#allocation5 + $0x4e0] sm:$0xff]  ;;  %1618 = vmatpush1.bf16.msra.mxu0 %v1617_v39 }
  0x82   :  { %v1619_v44 = vpack.c.bf16 %v269_v41, %v265_v38  ;;  %v145_v47 = vld [vmem:[#allocation5 + $0x108] sm:$0xff]  ;;  %1556 = vmatprep.subr.bf16.mxu1 %v1555_v40  ;;  %v1621_v52 = vpack.c.bf16 %v268_v46, %v264_v45  ;;  %v144_v54 = vld [vmem:[#allocation5 + $0x100] sm:$0xff] }
  0x83   :  { %v149_v48 = vld [vmem:[#allocation5 + $0x128] sm:$0xff]  ;;  %v148_v55 = vld [vmem:[#allocation5 + $0x120] sm:$0xff]  ;;  %1558 = vmatpush1.bf16.msra.mxu1 %v1557_v51 }
  0x84   :  { %v273_v49 = vld [vmem:[#allocation5 + $0x508] sm:$0xff]  ;;  %v1559_v53 = vpack.c.bf16 %v149_v48, %v145_v47  ;;  %v272_v56 = vld [vmem:[#allocation5 + $0x500] sm:$0xff]  ;;  %1620 = vmatprep.subr.bf16.mxu0 %v1619_v44  ;;  %v1561_v63 = vpack.c.bf16 %v148_v55, %v144_v54 }
  0x85   :  { %v277_v50 = vld [vmem:[#allocation5 + $0x528] sm:$0xff]  ;;  %v276_v58 = vld [vmem:[#allocation5 + $0x520] sm:$0xff]  ;;  %1622 = vmatpush1.bf16.msra.mxu0 %v1621_v52 }
  0x86   :  { %v1623_v57 = vpack.c.bf16 %v277_v50, %v273_v49  ;;  %v153_v59 = vld [vmem:[#allocation5 + $0x148] sm:$0xff]  ;;  %1560 = vmatprep.subr.bf16.mxu1 %v1559_v53  ;;  %v1625_v0 = vpack.c.bf16 %v276_v58, %v272_v56  ;;  %v152_v2 = vld [vmem:[#allocation5 + $0x140] sm:$0xff]  ;;  %v2261_v58 = vmov 1983009808  }
  0x87   :  { %v157_v60 = vld [vmem:[#allocation5 + $0x168] sm:$0xff]  ;;  %v156_v3 = vld [vmem:[#allocation5 + $0x160] sm:$0xff]  ;;  %1562 = vmatpush1.bf16.msra.mxu1 %v1561_v63 }
  0x88   :  { %v281_v61 = vld [vmem:[#allocation5 + $0x548] sm:$0xff]  ;;  %v1563_v1 = vpack.c.bf16 %v157_v60, %v153_v59  ;;  %v280_v4 = vld [vmem:[#allocation5 + $0x540] sm:$0xff]  ;;  %1624 = vmatprep.subr.bf16.mxu0 %v1623_v57  ;;  %v1565_v11 = vpack.c.bf16 %v156_v3, %v152_v2  ;;  %v506_v57 = vlaneseq  ;;  %v539_v59 = vunpack.c.l.s4 %v2261_v58 }
  0x89   :  { %v285_v62 = vld [vmem:[#allocation5 + $0x568] sm:$0xff]  ;;  %v284_v6 = vld [vmem:[#allocation5 + $0x560] sm:$0xff]  ;;  %1626 = vmatpush1.bf16.msra.mxu0 %v1625_v0 }
  0x8a   :  { %v1627_v5 = vpack.c.bf16 %v285_v62, %v281_v61  ;;  %v161_v7 = vld [vmem:[#allocation5 + $0x188] sm:$0xff]  ;;  %1564 = vmatprep.subr.bf16.mxu1 %v1563_v1  ;;  %v1629_v12 = vpack.c.bf16 %v284_v6, %v280_v4  ;;  %v160_v14 = vld [vmem:[#allocation5 + $0x180] sm:$0xff] }
  0x8b   :  { %v165_v8 = vld [vmem:[#allocation5 + $0x1a8] sm:$0xff]  ;;  %v164_v15 = vld [vmem:[#allocation5 + $0x1a0] sm:$0xff]  ;;  %1566 = vmatpush1.bf16.msra.mxu1 %v1565_v11 }
  0x8c   :  { %v289_v9 = vld [vmem:[#allocation5 + $0x588] sm:$0xff]  ;;  %v1567_v13 = vpack.c.bf16 %v165_v8, %v161_v7  ;;  %v288_v16 = vld [vmem:[#allocation5 + $0x580] sm:$0xff]  ;;  %1628 = vmatprep.subr.bf16.mxu0 %v1627_v5  ;;  %v1569_v23 = vpack.c.bf16 %v164_v15, %v160_v14  ;;  %v2378_v8 = vshrl.u32 %v506_v57, 7 }
  0x8d   :  { %v293_v10 = vld [vmem:[#allocation5 + $0x5a8] sm:$0xff]  ;;  %v292_v18 = vld [vmem:[#allocation5 + $0x5a0] sm:$0xff]  ;;  %1630 = vmatpush1.bf16.msra.mxu0 %v1629_v12 }
  0x8e   :  { %v1631_v17 = vpack.c.bf16 %v293_v10, %v289_v9  ;;  %v169_v19 = vld [vmem:[#allocation5 + $0x1c8] sm:$0xff]  ;;  %1568 = vmatprep.subr.bf16.mxu1 %v1567_v13  ;;  %v1633_v24 = vpack.c.bf16 %v292_v18, %v288_v16  ;;  %v168_v26 = vld [vmem:[#allocation5 + $0x1c0] sm:$0xff]  ;;  %v540_v9 = vunpack.c.0.s8 %v539_v59 }
  0x8f   :  { %v173_v20 = vld [vmem:[#allocation5 + $0x1e8] sm:$0xff]  ;;  %v172_v27 = vld [vmem:[#allocation5 + $0x1e0] sm:$0xff]  ;;  %1570 = vmatpush1.bf16.msra.mxu1 %v1569_v23 }
  0x90   :  { %v297_v21 = vld [vmem:[#allocation5 + $0x5c8] sm:$0xff]  ;;  %v1571_v25 = vpack.c.bf16 %v173_v20, %v169_v19  ;;  %v296_v28 = vld [vmem:[#allocation5 + $0x5c0] sm:$0xff]  ;;  %1632 = vmatprep.subr.bf16.mxu0 %v1631_v17  ;;  %v1573_v35 = vpack.c.bf16 %v172_v27, %v168_v26 }
  0x91   :  { %v301_v22 = vld [vmem:[#allocation5 + $0x5e8] sm:$0xff]  ;;  %v300_v30 = vld [vmem:[#allocation5 + $0x5e0] sm:$0xff]  ;;  %1634 = vmatpush1.bf16.msra.mxu0 %v1633_v24  ;;  %v2381_v24 = vsub.s32 %v540_v9, %v2378_v8 }
  0x92   :  { %v1635_v29 = vpack.c.bf16 %v301_v22, %v297_v21  ;;  %v177_v31 = vld [vmem:[#allocation5 + $0x208] sm:$0xff]  ;;  %1572 = vmatprep.subr.bf16.mxu1 %v1571_v25  ;;  %v1637_v36 = vpack.c.bf16 %v300_v30, %v296_v28  ;;  %v176_v38 = vld [vmem:[#allocation5 + $0x200] sm:$0xff] }
  0x93   :  { %v181_v32 = vld [vmem:[#allocation5 + $0x228] sm:$0xff]  ;;  %v180_v39 = vld [vmem:[#allocation5 + $0x220] sm:$0xff]  ;;  %1574 = vmatpush1.bf16.msra.mxu1 %v1573_v35 }
  0x94   :  { %v305_v33 = vld [vmem:[#allocation5 + $0x608] sm:$0xff]  ;;  %v1575_v37 = vpack.c.bf16 %v181_v32, %v177_v31  ;;  %v304_v40 = vld [vmem:[#allocation5 + $0x600] sm:$0xff]  ;;  %1636 = vmatprep.subr.bf16.mxu0 %v1635_v29  ;;  %v1577_v47 = vpack.c.bf16 %v180_v39, %v176_v38 }
  0x95   :  { %v309_v34 = vld [vmem:[#allocation5 + $0x628] sm:$0xff]  ;;  %v308_v42 = vld [vmem:[#allocation5 + $0x620] sm:$0xff]  ;;  %1638 = vmatpush1.bf16.msra.mxu0 %v1637_v36 }
  0x96   :  { %v1639_v41 = vpack.c.bf16 %v309_v34, %v305_v33  ;;  %v185_v43 = vld [vmem:[#allocation5 + $0x248] sm:$0xff]  ;;  %1576 = vmatprep.subr.bf16.mxu1 %v1575_v37  ;;  %v1641_v48 = vpack.c.bf16 %v308_v42, %v304_v40  ;;  %v184_v50 = vld [vmem:[#allocation5 + $0x240] sm:$0xff] }
  0x97   :  { %v189_v44 = vld [vmem:[#allocation5 + $0x268] sm:$0xff]  ;;  %v188_v51 = vld [vmem:[#allocation5 + $0x260] sm:$0xff]  ;;  %1578 = vmatpush1.bf16.msra.mxu1 %v1577_v47 }
  0x98   :  { %v313_v45 = vld [vmem:[#allocation5 + $0x648] sm:$0xff]  ;;  %v1579_v49 = vpack.c.bf16 %v189_v44, %v185_v43  ;;  %v312_v52 = vld [vmem:[#allocation5 + $0x640] sm:$0xff]  ;;  %1640 = vmatprep.subr.bf16.mxu0 %v1639_v41  ;;  %v1581_v62 = vpack.c.bf16 %v188_v51, %v184_v50 }
  0x99   :  { %v317_v46 = vld [vmem:[#allocation5 + $0x668] sm:$0xff]  ;;  %v316_v54 = vld [vmem:[#allocation5 + $0x660] sm:$0xff]  ;;  %1642 = vmatpush1.bf16.msra.mxu0 %v1641_v48 }
  0x9a   :  { %v1643_v53 = vpack.c.bf16 %v317_v46, %v313_v45  ;;  %v193_v55 = vld [vmem:[#allocation5 + $0x288] sm:$0xff]  ;;  %1580 = vmatprep.subr.bf16.mxu1 %v1579_v49  ;;  %v1645_v63 = vpack.c.bf16 %v316_v54, %v312_v52  ;;  %v192_v1 = vld [vmem:[#allocation5 + $0x280] sm:$0xff] }
  0x9b   :  { %v197_v56 = vld [vmem:[#allocation5 + $0x2a8] sm:$0xff]  ;;  %v196_v2 = vld [vmem:[#allocation5 + $0x2a0] sm:$0xff]  ;;  %1582 = vmatpush1.bf16.msra.mxu1 %v1581_v62 }
  0x9c   :  { %v321_v60 = vld [vmem:[#allocation5 + $0x688] sm:$0xff]  ;;  %v1583_v0 = vpack.c.bf16 %v197_v56, %v193_v55  ;;  %v320_v3 = vld [vmem:[#allocation5 + $0x680] sm:$0xff]  ;;  %1644 = vmatprep.subr.bf16.mxu0 %v1643_v53  ;;  %v1585_v12 = vpack.c.bf16 %v196_v2, %v192_v1 }
  0x9d   :  { %v325_v61 = vld [vmem:[#allocation5 + $0x6a8] sm:$0xff]  ;;  %v324_v5 = vld [vmem:[#allocation5 + $0x6a0] sm:$0xff]  ;;  %1646 = vmatpush1.bf16.msra.mxu0 %v1645_v63 }
  0x9e   :  { %v1647_v4 = vpack.c.bf16 %v325_v61, %v321_v60  ;;  %v201_v6 = vld [vmem:[#allocation5 + $0x2c8] sm:$0xff]  ;;  %v200_v13 = vld [vmem:[#allocation5 + $0x2c0] sm:$0xff]  ;;  %1584 = vmatprep.subr.bf16.mxu1 %v1583_v0  ;;  %v1649_v16 = vpack.c.bf16 %v324_v5, %v320_v3 }
  0x9f   :  { %v205_v7 = vld [vmem:[#allocation5 + $0x2e8] sm:$0xff]  ;;  %v204_v14 = vld [vmem:[#allocation5 + $0x2e0] sm:$0xff]  ;;  %1586 = vmatpush1.bf16.msra.mxu1 %v1585_v12 }
  0xa0   :  { %v329_v10 = vld [vmem:[#allocation5 + $0x6c8] sm:$0xff]  ;;  %v328_v15 = vld [vmem:[#allocation5 + $0x6c0] sm:$0xff]  ;;  %v1587_v17 = vpack.c.bf16 %v205_v7, %v201_v6  ;;  %1648 = vmatprep.subr.bf16.mxu0 %v1647_v4  ;;  %v1589_v26 = vpack.c.bf16 %v204_v14, %v200_v13 }
  0xa1   :  { %v333_v11 = vld [vmem:[#allocation5 + $0x6e8] sm:$0xff]  ;;  %v332_v18 = vld [vmem:[#allocation5 + $0x6e0] sm:$0xff]  ;;  %1650 = vmatpush1.bf16.msra.mxu0 %v1649_v16  ;;  %v115_v16 = vld [vmem:[#allocation5 + $0x18] sm:$0xff] }
  0xa2   :  { %v209_v19 = vld [vmem:[#allocation5 + $0x308] sm:$0xff]  ;;  %v1651_v21 = vpack.c.bf16 %v333_v11, %v329_v10  ;;  %v208_v25 = vld [vmem:[#allocation5 + $0x300] sm:$0xff]  ;;  %1588 = vmatprep.subr.bf16.mxu1 %v1587_v17  ;;  %v1653_v30 = vpack.c.bf16 %v332_v18, %v328_v15  ;;  %v119_v17 = vld [vmem:[#allocation5 + $0x38] sm:$0xff] }
  0xa3   :  { %v213_v20 = vld [vmem:[#allocation5 + $0x328] sm:$0xff]  ;;  %v2099_v28 = vld [vmem:[#allocation3 + $0x1c] ss:$14 sps:$4 sm:$0xff]   ;;  %1590 = vmatpush1.bf16.msra.mxu1 %v1589_v26 }
  0xa4   :  { %v337_v22 = vld [vmem:[#allocation5 + $0x708] sm:$0xff]  ;;  %v1591_v31 = vpack.c.bf16 %v213_v20, %v209_v19  ;;  %v212_v32 = vld [vmem:[#allocation5 + $0x320] sm:$0xff]  ;;  %1652 = vmatprep.subr.bf16.mxu0 %v1651_v21  ;;  %v2387_v40 = vrot.slane %v2099_v28, %v2381_v24  ;;  %v118_v26 = vld [vmem:[#allocation5 + $0x30] sm:$0xff] }
  0xa5   :  { %v341_v23 = vld [vmem:[#allocation5 + $0x728] sm:$0xff]  ;;  %v336_v33 = vld [vmem:[#allocation5 + $0x700] sm:$0xff]  ;;  %v1593_v45 = vpack.c.bf16 %v212_v32, %v208_v25  ;;  %1654 = vmatpush1.bf16.msra.mxu0 %v1653_v30  ;;  %v114_v25 = vld [vmem:[#allocation5 + $0x10] sm:$0xff] }
  0xa6   :  { %v2097_v27 = vld [vmem:[#allocation3] ss:$14 sps:$4 sm:$0xff]   ;;  %v2101_v29 = vld [vmem:[#allocation3 + $0x4] ss:$14 sps:$4 sm:$0xff]   ;;  %v1655_v35 = vpack.c.bf16 %v341_v23, %v337_v22  ;;  %v340_v36 = vld [vmem:[#allocation5 + $0x720] sm:$0xff]  ;;  %1592 = vmatprep.subr.bf16.mxu1 %v1591_v31  ;;  %v1739_v22 = vpack.c.bf16 %v119_v17, %v115_v16 }
  0xa7   :  { %v2102_v34 = vld [vmem:[#allocation3 + $0x20] ss:$14 sps:$4 sm:$0xff]   ;;  %v2384_v39 = vrot.slane %v2097_v27, %v2381_v24  ;;  %v2390_v41 = vrot.slane %v2101_v29, %v2381_v24  ;;  %v1657_v47 = vpack.c.bf16 %v340_v36, %v336_v33  ;;  %v216_v49 = vld [vmem:[#allocation5 + $0x340] sm:$0xff]  ;;  %1594 = vmatpush1.bf16.msra.mxu1 %v1593_v45 }
  0xa8   :  { %v217_v37 = vld [vmem:[#allocation5 + $0x348] sm:$0xff]  ;;  %v2393_v44 = vrot.slane %v2102_v34, %v2381_v24  ;;  %v220_v50 = vld [vmem:[#allocation5 + $0x360] sm:$0xff]  ;;  %1656 = vmatprep.subr.bf16.mxu0 %v1655_v35  ;;  %v123_v29 = vld [vmem:[#allocation5 + $0x58] sm:$0xff]  ;;  %v1741_v35 = vpack.c.bf16 %v118_v26, %v114_v25 }
  0xa9   :  { %v221_v38 = vld [vmem:[#allocation5 + $0x368] sm:$0xff]  ;;  %v2397_v46 = vcombine.high %v2384_v39, %v2387_v40  ;;  %v344_v51 = vld [vmem:[#allocation5 + $0x740] sm:$0xff]  ;;  %v1597_v59 = vpack.c.bf16 %v220_v50, %v216_v49  ;;  %1658 = vmatpush1.bf16.msra.mxu0 %v1657_v47  ;;  %v127_v30 = vld [vmem:[#allocation5 + $0x78] sm:$0xff]  ;;  %v2407_v31 = vcombine.low %v2384_v39, %v2387_v40 }
  0xaa   :  { %v345_v42 = vld [vmem:[#allocation5 + $0x748] sm:$0xff]  ;;  %v1595_v48 = vpack.c.bf16 %v221_v38, %v217_v37  ;;  %v2401_v52 = vcombine.high %v2390_v41, %v2393_v44  ;;  %v348_v54 = vld [vmem:[#allocation5 + $0x760] sm:$0xff]  ;;  %v2411_v34 = vcombine.low %v2390_v41, %v2393_v44  ;;  %v1743_v37 = vpack.c.bf16 %v127_v30, %v123_v29  ;;  %v131_v39 = vld [vmem:[#allocation5 + $0x98] sm:$0xff] }
  0xab   :  { %v349_v43 = vld [vmem:[#allocation5 + $0x768] sm:$0xff]  ;;  %678 = vmatprep.mubr.f32.mxu1 %v2397_v46  ;;  %v1661_v60 = vpack.c.bf16 %v348_v54, %v344_v51  ;;  %v224_v62 = vld [vmem:[#allocation5 + $0x380] sm:$0xff]  ;;  %v135_v40 = vld [vmem:[#allocation5 + $0xb8] sm:$0xff] }
  0xac   :  { %v1659_v53 = vpack.c.bf16 %v349_v43, %v345_v42  ;;  %v225_v55 = vld [vmem:[#allocation5 + $0x388] sm:$0xff]  ;;  %749 = vmatprep.mubr.f32.mxu0 %v2401_v52  ;;  %1596 = vmatprep.subr.bf16.mxu1 %v1595_v48  ;;  %v228_v63 = vld [vmem:[#allocation5 + $0x3a0] sm:$0xff]  ;;  %v122_v42 = vld [vmem:[#allocation5 + $0x50] sm:$0xff]  ;;  %v1747_v50 = vpack.c.bf16 %v135_v40, %v131_v39 }
  0xad   :  { %v229_v56 = vld [vmem:[#allocation5 + $0x3a8] sm:$0xff]  ;;  %v352_v0 = vld [vmem:[#allocation5 + $0x780] sm:$0xff]  ;;  %1598 = vmatpush1.bf16.msra.mxu1 %v1597_v59  ;;  %v1601_v7 = vpack.c.bf16 %v228_v63, %v224_v62  ;;  %v126_v43 = vld [vmem:[#allocation5 + $0x70] sm:$0xff] }
  0xae   :  { %v353_v57 = vld [vmem:[#allocation5 + $0x788] sm:$0xff]  ;;  %v1599_v61 = vpack.c.bf16 %v229_v56, %v225_v55  ;;  %1660 = vmatprep.subr.bf16.mxu0 %v1659_v53  ;;  %v356_v2 = vld [vmem:[#allocation5 + $0x7a0] sm:$0xff]  ;;  %v1745_v41 = vpack.c.bf16 %v126_v43, %v122_v42  ;;  %v130_v53 = vld [vmem:[#allocation5 + $0x90] sm:$0xff] }
  0xaf   :  { %v357_v58 = vld [vmem:[#allocation5 + $0x7a8] sm:$0xff]  ;;  %1662 = vmatpush1.bf16.msra.mxu0 %v1661_v60  ;;  %v1665_v9 = vpack.c.bf16 %v356_v2, %v352_v0  ;;  %v232_v11 = vld [vmem:[#allocation5 + $0x3c0] sm:$0xff]  ;;  %v134_v54 = vld [vmem:[#allocation5 + $0xb0] sm:$0xff] }
  0xb0   :  { %v1663_v1 = vpack.c.bf16 %v357_v58, %v353_v57  ;;  %v233_v3 = vld [vmem:[#allocation5 + $0x3c8] sm:$0xff]  ;;  %1600 = vmatprep.subr.bf16.mxu1 %v1599_v61  ;;  %v236_v12 = vld [vmem:[#allocation5 + $0x3e0] sm:$0xff]  ;;  %v139_v57 = vld [vmem:[#allocation5 + $0xd8] sm:$0xff]  ;;  %v1749_v61 = vpack.c.bf16 %v134_v54, %v130_v53 }
  0xb1   :  { %v237_v4 = vld [vmem:[#allocation5 + $0x3e8] sm:$0xff]  ;;  %v360_v13 = vld [vmem:[#allocation5 + $0x7c0] sm:$0xff]  ;;  %1602 = vmatpush1.bf16.msra.mxu1 %v1601_v7  ;;  %v1605_v20 = vpack.c.bf16 %v236_v12, %v232_v11  ;;  %v143_v58 = vld [vmem:[#allocation5 + $0xf8] sm:$0xff] }
  0xb2   :  { %v361_v5 = vld [vmem:[#allocation5 + $0x7c8] sm:$0xff]  ;;  %v1603_v10 = vpack.c.bf16 %v237_v4, %v233_v3  ;;  %1664 = vmatprep.subr.bf16.mxu0 %v1663_v1  ;;  %v364_v15 = vld [vmem:[#allocation5 + $0x7e0] sm:$0xff]  ;;  %v1751_v63 = vpack.c.bf16 %v143_v58, %v139_v57  ;;  %v138_v1 = vld [vmem:[#allocation5 + $0xd0] sm:$0xff] }
  0xb3   :  { %v365_v6 = vld [vmem:[#allocation5 + $0x7e8] sm:$0xff]  ;;  %1666 = vmatpush1.bf16.msra.mxu0 %v1665_v9  ;;  %v1669_v21 = vpack.c.bf16 %v364_v15, %v360_v13  ;;  %v368_v23 = vld [vmem:[#allocation5 + $0x800] sm:$0xff]  ;;  %v142_v2 = vld [vmem:[#allocation5 + $0xf0] sm:$0xff] }
  0xb4   :  { %v1667_v14 = vpack.c.bf16 %v365_v6, %v361_v5  ;;  %v369_v18 = vld [vmem:[#allocation5 + $0x808] sm:$0xff]  ;;  %1604 = vmatprep.subr.bf16.mxu1 %v1603_v10  ;;  %v372_v28 = vld [vmem:[#allocation5 + $0x820] sm:$0xff]  ;;  %v147_v5 = vld [vmem:[#allocation5 + $0x118] sm:$0xff] }
  0xb5   :  { %v373_v19 = vld [vmem:[#allocation5 + $0x828] sm:$0xff]  ;;  %1606 = vmatpush1.bf16.msra.mxu1 %v1605_v20  ;;  %v1673_v36 = vpack.c.bf16 %v372_v28, %v368_v23  ;;  %v376_v38 = vld [vmem:[#allocation5 + $0x840] sm:$0xff]  ;;  %v151_v6 = vld [vmem:[#allocation5 + $0x138] sm:$0xff] }
  0xb6   :  { %1668 = vmatprep.subr.bf16.mxu0 %v1667_v14  ;;  %v1671_v27 = vpack.c.bf16 %v373_v19, %v369_v18  ;;  %v377_v32 = vld [vmem:[#allocation5 + $0x848] sm:$0xff]  ;;  %1740 = vmatprep.subr.bf16.mxu1 %v1739_v22  ;;  %v380_v47 = vld [vmem:[#allocation5 + $0x860] sm:$0xff]  ;;  %v1755_v11 = vpack.c.bf16 %v151_v6, %v147_v5  ;;  %v146_v13 = vld [vmem:[#allocation5 + $0x110] sm:$0xff] }
  0xb7   :  { %v381_v33 = vld [vmem:[#allocation5 + $0x868] sm:$0xff]  ;;  %1670 = vmatpush1.bf16.msra.mxu0 %v1669_v21  ;;  %v1677_v44 = vpack.c.bf16 %v380_v47, %v376_v38  ;;  %v384_v51 = vld [vmem:[#allocation5 + $0x880] sm:$0xff]  ;;  %v150_v14 = vld [vmem:[#allocation5 + $0x130] sm:$0xff] }
  0xb8   :  { %1672 = vmatprep.subr.bf16.mxu0 %v1671_v27  ;;  %v1675_v45 = vpack.c.bf16 %v381_v33, %v377_v32  ;;  %679 = vmatmul.mubr.f32.vlgmr.msra.gmra.mrb[0].mxu1 %v2407_v31  ;;  %v385_v48 = vld [vmem:[#allocation5 + $0x888] sm:$0xff]  ;;  %v388_v56 = vld [vmem:[#allocation5 + $0x8a0] sm:$0xff]  ;;  %v155_v17 = vld [vmem:[#allocation5 + $0x158] sm:$0xff]  ;;  %v1757_v21 = vpack.c.bf16 %v150_v14, %v146_v13 }
  0xb9   :  { %v389_v49 = vld [vmem:[#allocation5 + $0x8a8] sm:$0xff]  ;;  %1742 = vmatpush1.bf16.msra.mxu1 %v1741_v35  ;;  %962 = vmatprep.mubr.f32.mxu1 %v2397_v46  ;;  %v1681_v62 = vpack.c.bf16 %v388_v56, %v384_v51  ;;  %v392_v0 = vld [vmem:[#allocation5 + $0x8c0] sm:$0xff]  ;;  %v1753_v46 = vpack.c.bf16 %v142_v2, %v138_v1  ;;  %v159_v18 = vld [vmem:[#allocation5 + $0x178] sm:$0xff] }
  0xba   :  { %750 = vmatmul.mubr.f32.vlgmr.msra.gmra.mrb[0].mxu0 %v2411_v34  ;;  %1744 = vmatprep.subr.bf16.mxu1 %v1743_v37  ;;  %v1679_v55 = vpack.c.bf16 %v389_v49, %v385_v48  ;;  %v393_v59 = vld [vmem:[#allocation5 + $0x8c8] sm:$0xff]  ;;  %v396_v4 = vld [vmem:[#allocation5 + $0x8e0] sm:$0xff]  ;;  %v1759_v23 = vpack.c.bf16 %v159_v18, %v155_v17  ;;  %v154_v26 = vld [vmem:[#allocation5 + $0x150] sm:$0xff] }
  0xbb   :  { %1674 = vmatpush1.bf16.msra.mxu0 %v1673_v36  ;;  %v397_v60 = vld [vmem:[#allocation5 + $0x8e8] sm:$0xff]  ;;  %v1685_v10 = vpack.c.bf16 %v396_v4, %v392_v0  ;;  %v400_v12 = vld [vmem:[#allocation5 + $0x900] sm:$0xff]  ;;  %v158_v27 = vld [vmem:[#allocation5 + $0x170] sm:$0xff] }
  0xbc   :  { %1676 = vmatprep.subr.bf16.mxu0 %v1675_v45  ;;  %v1683_v3 = vpack.c.bf16 %v397_v60, %v393_v59  ;;  %v401_v7 = vld [vmem:[#allocation5 + $0x908] sm:$0xff]  ;;  %v404_v16 = vld [vmem:[#allocation5 + $0x920] sm:$0xff]  ;;  %v163_v30 = vld [vmem:[#allocation5 + $0x198] sm:$0xff]  ;;  %v1761_v36 = vpack.c.bf16 %v158_v27, %v154_v26 }
  0xbd   :  { %1746 = vmatpush1.bf16.msra.mxu1 %v1745_v41  ;;  %v405_v9 = vld [vmem:[#allocation5 + $0x928] sm:$0xff]  ;;  %v1689_v22 = vpack.c.bf16 %v404_v16, %v400_v12  ;;  %v408_v25 = vld [vmem:[#allocation5 + $0x940] sm:$0xff]  ;;  %v167_v32 = vld [vmem:[#allocation5 + $0x1b8] sm:$0xff] }
  0xbe   :  { %1748 = vmatprep.subr.bf16.mxu1 %v1747_v50  ;;  %v1687_v15 = vpack.c.bf16 %v405_v9, %v401_v7  ;;  %v409_v19 = vld [vmem:[#allocation5 + $0x948] sm:$0xff]  ;;  %v412_v29 = vld [vmem:[#allocation5 + $0x960] sm:$0xff]  ;;  %v1763_v42 = vpack.c.bf16 %v167_v32, %v163_v30  ;;  %v162_v45 = vld [vmem:[#allocation5 + $0x190] sm:$0xff] }
  0xbf   :  { %1678 = vmatpush1.bf16.msra.mxu0 %v1677_v44  ;;  %v413_v20 = vld [vmem:[#allocation5 + $0x968] sm:$0xff]  ;;  %v416_v37 = vld [vmem:[#allocation5 + $0x980] sm:$0xff]  ;;  %v1693_v38 = vpack.c.bf16 %v412_v29, %v408_v25  ;;  %v166_v47 = vld [vmem:[#allocation5 + $0x1b0] sm:$0xff] }
  0xc0   :  { %1680 = vmatprep.subr.bf16.mxu0 %v1679_v55  ;;  %v1691_v28 = vpack.c.bf16 %v413_v20, %v409_v19  ;;  %v417_v33 = vld [vmem:[#allocation5 + $0x988] sm:$0xff]  ;;  %v420_v43 = vld [vmem:[#allocation5 + $0x9a0] sm:$0xff]  ;;  %v171_v48 = vld [vmem:[#allocation5 + $0x1d8] sm:$0xff]  ;;  %v1765_v51 = vpack.c.bf16 %v166_v47, %v162_v45 }
  0xc1   :  { %1750 = vmatpush1.bf16.msra.mxu1 %v1749_v61  ;;  %v421_v35 = vld [vmem:[#allocation5 + $0x9a8] sm:$0xff]  ;;  %v175_v49 = vld [vmem:[#allocation5 + $0x1f8] sm:$0xff]  ;;  %v170_v44 = vld [vmem:[#allocation5 + $0x1d0] sm:$0xff]  ;;  %v1697_v54 = vpack.c.bf16 %v420_v43, %v416_v37 }
  0xc2   :  { %1752 = vmatprep.subr.bf16.mxu1 %v1751_v63  ;;  %v1695_v39 = vpack.c.bf16 %v421_v35, %v417_v33  ;;  %v425_v40 = vld [vmem:[#allocation5 + $0x9c8] sm:$0xff]  ;;  %v174_v50 = vld [vmem:[#allocation5 + $0x1f0] sm:$0xff]  ;;  %v424_v53 = vld [vmem:[#allocation5 + $0x9c0] sm:$0xff]  ;;  %v1767_v55 = vpack.c.bf16 %v175_v49, %v171_v48 }
  0xc3   :  { %1682 = vmatpush1.bf16.msra.mxu0 %v1681_v62  ;;  %v429_v41 = vld [vmem:[#allocation5 + $0x9e8] sm:$0xff]  ;;  %v2103_v56 = vld [vmem:[#allocation3 + $0x8] ss:$14 sps:$4 sm:$0xff]   ;;  %v1769_v2 = vpack.c.bf16 %v174_v50, %v170_v44 }
  0xc4   :  { %1684 = vmatprep.subr.bf16.mxu0 %v1683_v3  ;;  %v2106_v57 = vld [vmem:[#allocation3 + $0x24] ss:$14 sps:$4 sm:$0xff]   ;;  %v1699_v58 = vpack.c.bf16 %v429_v41, %v425_v40  ;;  %v428_v59 = vld [vmem:[#allocation5 + $0x9e0] sm:$0xff]  ;;  %v2417_v0 = vrot.slane %v2103_v56, %v2381_v24  ;;  %v178_v6 = vld [vmem:[#allocation5 + $0x210] sm:$0xff] }
  0xc5   :  { %1754 = vmatpush1.bf16.msra.mxu1 %v1753_v46  ;;  %v179_v60 = vld [vmem:[#allocation5 + $0x218] sm:$0xff]  ;;  %v433_v62 = vld [vmem:[#allocation5 + $0xa08] sm:$0xff]  ;;  %v2420_v1 = vrot.slane %v2106_v57, %v2381_v24  ;;  %v1701_v3 = vpack.c.bf16 %v428_v59, %v424_v53  ;;  %v432_v5 = vld [vmem:[#allocation5 + $0xa00] sm:$0xff] }
  0xc6   :  { %1756 = vmatprep.subr.bf16.mxu1 %v1755_v11  ;;  %v183_v61 = vld [vmem:[#allocation5 + $0x238] sm:$0xff]  ;;  %v437_v63 = vld [vmem:[#allocation5 + $0xa28] sm:$0xff]  ;;  %v182_v7 = vld [vmem:[#allocation5 + $0x230] sm:$0xff] }
  0xc7   :  { %1686 = vmatpush1.bf16.msra.mxu0 %v1685_v10  ;;  %v1771_v4 = vpack.c.bf16 %v183_v61, %v179_v60  ;;  %v2424_v9 = vcombine.high %v2417_v0, %v2420_v1  ;;  %v1703_v46 = vpack.c.bf16 %v437_v63, %v433_v62  ;;  %v436_v10 = vld [vmem:[#allocation5 + $0xa20] sm:$0xff]  ;;  %v187_v11 = vld [vmem:[#allocation5 + $0x258] sm:$0xff]  ;;  %v441_v13 = vld [vmem:[#allocation5 + $0xa48] sm:$0xff] }
  0xc8   :  { %1688 = vmatprep.subr.bf16.mxu0 %v1687_v15  ;;  %v191_v12 = vld [vmem:[#allocation5 + $0x278] sm:$0xff]  ;;  %v445_v14 = vld [vmem:[#allocation5 + $0xa68] sm:$0xff]  ;;  %v1773_v15 = vpack.c.bf16 %v182_v7, %v178_v6  ;;  %v1705_v16 = vpack.c.bf16 %v436_v10, %v432_v5  ;;  %v440_v18 = vld [vmem:[#allocation5 + $0xa40] sm:$0xff] }
  0xc9   :  { %1758 = vmatpush1.bf16.msra.mxu1 %v1757_v21  ;;  %820 = vmatprep.mubr.f32.mxu0 %v2424_v9  ;;  %v1775_v17 = vpack.c.bf16 %v191_v12, %v187_v11  ;;  %v186_v19 = vld [vmem:[#allocation5 + $0x250] sm:$0xff]  ;;  %v1707_v21 = vpack.c.bf16 %v445_v14, %v441_v13  ;;  %v199_v25 = vld [vmem:[#allocation5 + $0x2b8] sm:$0xff]  ;;  %v449_v26 = vld [vmem:[#allocation5 + $0xa88] sm:$0xff] }
  0xca   :  { %1760 = vmatprep.subr.bf16.mxu1 %v1759_v23  ;;  %v190_v20 = vld [vmem:[#allocation5 + $0x270] sm:$0xff]  ;;  %v195_v23 = vld [vmem:[#allocation5 + $0x298] sm:$0xff]  ;;  %v453_v27 = vld [vmem:[#allocation5 + $0xaa8] sm:$0xff] }
  0xcb   :  { %1690 = vmatpush1.bf16.msra.mxu0 %v1689_v22  ;;  %v444_v22 = vld [vmem:[#allocation5 + $0xa60] sm:$0xff]  ;;  %v1779_v30 = vpack.c.bf16 %v199_v25, %v195_v23  ;;  %v194_v33 = vld [vmem:[#allocation5 + $0x290] sm:$0xff]  ;;  %v457_v43 = vld [vmem:[#allocation5 + $0xac8] sm:$0xff] }
  0xcc   :  { %1692 = vmatprep.subr.bf16.mxu0 %v1691_v28  ;;  %v1777_v28 = vpack.c.bf16 %v190_v20, %v186_v19  ;;  %v1709_v29 = vpack.c.bf16 %v444_v22, %v440_v18  ;;  %v448_v32 = vld [vmem:[#allocation5 + $0xa80] sm:$0xff]  ;;  %v198_v35 = vld [vmem:[#allocation5 + $0x2b0] sm:$0xff]  ;;  %v461_v45 = vld [vmem:[#allocation5 + $0xae8] sm:$0xff] }
  0xcd   :  { %1762 = vmatpush1.bf16.msra.mxu1 %v1761_v36  ;;  %v1711_v36 = vpack.c.bf16 %v453_v27, %v449_v26  ;;  %v452_v37 = vld [vmem:[#allocation5 + $0xaa0] sm:$0xff]  ;;  %v1781_v47 = vpack.c.bf16 %v198_v35, %v194_v33  ;;  %v202_v49 = vld [vmem:[#allocation5 + $0x2d0] sm:$0xff]  ;;  %v1715_v44 = vpack.c.bf16 %v461_v45, %v457_v43  ;;  %v215_v53 = vld [vmem:[#allocation5 + $0x338] sm:$0xff] }
  0xce   :  { %1764 = vmatprep.subr.bf16.mxu1 %v1763_v42  ;;  %v207_v42 = vld [vmem:[#allocation5 + $0x2f8] sm:$0xff]  ;;  %v456_v48 = vld [vmem:[#allocation5 + $0xac0] sm:$0xff]  ;;  %v206_v41 = vld [vmem:[#allocation5 + $0x2f0] sm:$0xff] }
  0xcf   :  { %1694 = vmatpush1.bf16.msra.mxu0 %v1693_v38  ;;  %v203_v38 = vld [vmem:[#allocation5 + $0x2d8] sm:$0xff]  ;;  %v460_v50 = vld [vmem:[#allocation5 + $0xae0] sm:$0xff]  ;;  %v1785_v56 = vpack.c.bf16 %v206_v41, %v202_v49  ;;  %v210_v60 = vld [vmem:[#allocation5 + $0x310] sm:$0xff] }
  0xd0   :  { %1696 = vmatprep.subr.bf16.mxu0 %v1695_v39  ;;  %v1713_v39 = vpack.c.bf16 %v452_v37, %v448_v32  ;;  %v1783_v40 = vpack.c.bf16 %v207_v42, %v203_v38  ;;  %v1717_v57 = vpack.c.bf16 %v460_v50, %v456_v48  ;;  %v464_v59 = vld [vmem:[#allocation5 + $0xb00] sm:$0xff]  ;;  %v214_v61 = vld [vmem:[#allocation5 + $0x330] sm:$0xff]  ;;  %v477_v5 = vld [vmem:[#allocation5 + $0xb68] sm:$0xff] }
  0xd1   :  { %1766 = vmatpush1.bf16.msra.mxu1 %v1765_v51  ;;  %v211_v51 = vld [vmem:[#allocation5 + $0x318] sm:$0xff]  ;;  %v468_v63 = vld [vmem:[#allocation5 + $0xb20] sm:$0xff]  ;;  %v1789_v6 = vpack.c.bf16 %v214_v61, %v210_v60  ;;  %v218_v11 = vld [vmem:[#allocation5 + $0x350] sm:$0xff]  ;;  %v2429_v60 = vcombine.low %v2417_v0, %v2420_v1 }
  0xd2   :  { %1768 = vmatprep.subr.bf16.mxu1 %v1767_v55  ;;  %v469_v55 = vld [vmem:[#allocation5 + $0xb28] sm:$0xff]  ;;  %v1721_v7 = vpack.c.bf16 %v468_v63, %v464_v59  ;;  %v472_v10 = vld [vmem:[#allocation5 + $0xb40] sm:$0xff]  ;;  %v222_v12 = vld [vmem:[#allocation5 + $0x370] sm:$0xff] }
  0xd3   :  { %1698 = vmatpush1.bf16.msra.mxu0 %v1697_v54  ;;  %v465_v54 = vld [vmem:[#allocation5 + $0xb08] sm:$0xff]  ;;  %v476_v14 = vld [vmem:[#allocation5 + $0xb60] sm:$0xff]  ;;  %v1793_v19 = vpack.c.bf16 %v222_v12, %v218_v11  ;;  %v226_v23 = vld [vmem:[#allocation5 + $0x390] sm:$0xff]  ;;  %v2262_v11 = vmov 0.0  }
  0xd4   :  { %1700 = vmatprep.subr.bf16.mxu0 %v1699_v58  ;;  %v1787_v58 = vpack.c.bf16 %v215_v53, %v211_v51  ;;  %v1719_v62 = vpack.c.bf16 %v469_v55, %v465_v54  ;;  %v485_v18 = vld [vmem:[#allocation5 + $0xba8] sm:$0xff]  ;;  %v1725_v20 = vpack.c.bf16 %v476_v14, %v472_v10  ;;  %v480_v22 = vld [vmem:[#allocation5 + $0xb80] sm:$0xff]  ;;  %v230_v25 = vld [vmem:[#allocation5 + $0x3b0] sm:$0xff] }
  0xd5   :  { %1770 = vmatpush1.bf16.msra.mxu1 %v1769_v2  ;;  %v219_v2 = vld [vmem:[#allocation5 + $0x358] sm:$0xff]  ;;  %v484_v27 = vld [vmem:[#allocation5 + $0xba0] sm:$0xff]  ;;  %v493_v32 = vld [vmem:[#allocation5 + $0xbe8] sm:$0xff]  ;;  %v1797_v33 = vpack.c.bf16 %v230_v25, %v226_v23 }
  0xd6   :  { %1772 = vmatprep.subr.bf16.mxu1 %v1771_v4  ;;  %v473_v4 = vld [vmem:[#allocation5 + $0xb48] sm:$0xff]  ;;  %v1729_v35 = vpack.c.bf16 %v484_v27, %v480_v22  ;;  %v488_v37 = vld [vmem:[#allocation5 + $0xbc0] sm:$0xff]  ;;  %v234_v38 = vld [vmem:[#allocation5 + $0x3d0] sm:$0xff] }
  0xd7   :  { %1702 = vmatpush1.bf16.msra.mxu0 %v1701_v3  ;;  %v223_v3 = vld [vmem:[#allocation5 + $0x378] sm:$0xff]  ;;  %v1723_v13 = vpack.c.bf16 %v477_v5, %v473_v4  ;;  %v238_v42 = vld [vmem:[#allocation5 + $0x3f0] sm:$0xff]  ;;  %v492_v45 = vld [vmem:[#allocation5 + $0xbe0] sm:$0xff] }
  0xd8   :  { %1704 = vmatprep.subr.bf16.mxu0 %v1703_v46  ;;  %v1791_v46 = vpack.c.bf16 %v223_v3, %v219_v2  ;;  %v501_v48 = vld [vmem:[#allocation5 + $0xc28] sm:$0xff]  ;;  %v1801_v49 = vpack.c.bf16 %v238_v42, %v234_v38  ;;  %v1733_v41 = vpack.c.bf16 %v492_v45, %v488_v37  ;;  %v242_v50 = vld [vmem:[#allocation5 + $0x410] sm:$0xff]  ;;  %v251_v53 = vld [vmem:[#allocation5 + $0x458] sm:$0xff] }
  0xd9   :  { %1774 = vmatpush1.bf16.msra.mxu1 %v1773_v15  ;;  %v227_v15 = vld [vmem:[#allocation5 + $0x398] sm:$0xff]  ;;  %v246_v51 = vld [vmem:[#allocation5 + $0x430] sm:$0xff] }
  0xda   :  { %1776 = vmatprep.subr.bf16.mxu1 %v1775_v17  ;;  %v481_v17 = vld [vmem:[#allocation5 + $0xb88] sm:$0xff]  ;;  %v255_v55 = vld [vmem:[#allocation5 + $0x478] sm:$0xff]  ;;  %v1805_v61 = vpack.c.bf16 %v246_v51, %v242_v50  ;;  %v250_v2 = vld [vmem:[#allocation5 + $0x450] sm:$0xff] }
  0xdb   :  { %1706 = vmatpush1.bf16.msra.mxu0 %v1705_v16  ;;  %v231_v16 = vld [vmem:[#allocation5 + $0x3b8] sm:$0xff]  ;;  %v1727_v26 = vpack.c.bf16 %v485_v18, %v481_v17  ;;  %v254_v3 = vld [vmem:[#allocation5 + $0x470] sm:$0xff] }
  0xdc   :  { %1708 = vmatprep.subr.bf16.mxu0 %v1707_v21  ;;  %v1795_v21 = vpack.c.bf16 %v231_v16, %v227_v15  ;;  %v2108_v59 = vld [vmem:[#allocation3 + $0x28] ss:$14 sps:$4 sm:$0x33]   ;;  %v1809_v0 = vpack.c.bf16 %v254_v3, %v250_v2  ;;  %v1188_v50 = vld [vmem:[#allocation8 + $0x10] sm:$0xff] }
  0xdd   :  { %1778 = vmatpush1.bf16.msra.mxu1 %v1777_v28  ;;  %v235_v28 = vld [vmem:[#allocation5 + $0x3d8] sm:$0xff]  ;;  %v262_v10 = vld [vmem:[#allocation5 + $0x4b0] sm:$0xff] }
  0xde   :  { %1780 = vmatprep.subr.bf16.mxu1 %v1779_v30  ;;  %v489_v30 = vld [vmem:[#allocation5 + $0xbc8] sm:$0xff]  ;;  %v259_v4 = vld [vmem:[#allocation5 + $0x498] sm:$0xff]  ;;  %v266_v15 = vld [vmem:[#allocation5 + $0x4d0] sm:$0xff] }
  0xdf   :  { %1710 = vmatpush1.bf16.msra.mxu0 %v1709_v29  ;;  %v239_v29 = vld [vmem:[#allocation5 + $0x3f8] sm:$0xff]  ;;  %v1731_v43 = vpack.c.bf16 %v493_v32, %v489_v30  ;;  %v270_v16 = vld [vmem:[#allocation5 + $0x4f0] sm:$0xff] }
  0xe0   :  { %1712 = vmatprep.subr.bf16.mxu0 %v1711_v36  ;;  %v1799_v36 = vpack.c.bf16 %v239_v29, %v235_v28  ;;  %v263_v5 = vld [vmem:[#allocation5 + $0x4b8] sm:$0xff]  ;;  %v282_v27 = vld [vmem:[#allocation5 + $0x550] sm:$0xff] }
  0xe1   :  { %1782 = vmatpush1.bf16.msra.mxu1 %v1781_v47  ;;  %v243_v47 = vld [vmem:[#allocation5 + $0x418] sm:$0xff]  ;;  %v1811_v1 = vpack.c.bf16 %v263_v5, %v259_v4  ;;  %v286_v28 = vld [vmem:[#allocation5 + $0x570] sm:$0xff] }
  0xe2   :  { %1784 = vmatprep.subr.bf16.mxu1 %v1783_v40  ;;  %v497_v40 = vld [vmem:[#allocation5 + $0xc08] sm:$0xff]  ;;  %v267_v12 = vld [vmem:[#allocation5 + $0x4d8] sm:$0xff]  ;;  %v1825_v32 = vpack.c.bf16 %v286_v28, %v282_v27  ;;  %v298_v42 = vld [vmem:[#allocation5 + $0x5d0] sm:$0xff] }
  0xe3   :  { %1714 = vmatpush1.bf16.msra.mxu0 %v1713_v39  ;;  %v247_v39 = vld [vmem:[#allocation5 + $0x438] sm:$0xff]  ;;  %v1735_v54 = vpack.c.bf16 %v501_v48, %v497_v40  ;;  %v1187_v40 = vld [vmem:[#allocation8 + $0x8] sm:$0xff] }
  0xe4   :  { %1716 = vmatprep.subr.bf16.mxu0 %v1715_v44  ;;  %v1803_v44 = vpack.c.bf16 %v247_v39, %v243_v47  ;;  %v275_v17 = vld [vmem:[#allocation5 + $0x518] sm:$0xff]  ;;  %v1191_v51 = vld [vmem:[#allocation8 + $0x28] sm:$0xff] }
  0xe5   :  { %1786 = vmatpush1.bf16.msra.mxu1 %v1785_v56  ;;  %v496_v56 = vld [vmem:[#allocation5 + $0xc00] sm:$0xff]  ;;  %v279_v18 = vld [vmem:[#allocation5 + $0x538] sm:$0xff] }
  0xe6   :  { %1788 = vmatprep.subr.bf16.mxu1 %v1787_v58  ;;  %v2105_v58 = vld [vmem:[#allocation3 + $0xc] ss:$14 sps:$4 sm:$0x33]   ;;  %v283_v22 = vld [vmem:[#allocation5 + $0x558] sm:$0xff] }
  0xe7   :  { %1718 = vmatpush1.bf16.msra.mxu0 %v1717_v57  ;;  %v500_v57 = vld [vmem:[#allocation5 + $0xc20] sm:$0xff]  ;;  %v287_v23 = vld [vmem:[#allocation5 + $0x578] sm:$0xff] }
  0xe8   :  { %1720 = vmatprep.subr.bf16.mxu0 %v1719_v62  ;;  %v1807_v62 = vpack.c.bf16 %v255_v55, %v251_v53  ;;  %v1737_v63 = vpack.c.bf16 %v500_v57, %v496_v56  ;;  %v291_v29 = vld [vmem:[#allocation5 + $0x598] sm:$0xff]  ;;  %v1190_v56 = vld [vmem:[#allocation8 + $0x20] sm:$0xff] }
  0xe9   :  { %1790 = vmatpush1.bf16.msra.mxu1 %v1789_v6  ;;  %v587_v6 = vrot.slane %v2105_v58, %v2381_v24  ;;  %v295_v30 = vld [vmem:[#allocation5 + $0x5b8] sm:$0xff]  ;;  %v1195_v58 = vld [vmem:[#allocation8 + $0x48] sm:$0xff] }
  0xea   :  { %1792 = vmatprep.subr.bf16.mxu1 %v1791_v46  ;;  %v258_v46 = vld [vmem:[#allocation5 + $0x490] sm:$0xff]  ;;  %v299_v37 = vld [vmem:[#allocation5 + $0x5d8] sm:$0xff] }
  0xeb   :  { %1722 = vmatpush1.bf16.msra.mxu0 %v1721_v7  ;;  %v601_v7 = vrot.slane %v2108_v59, %v2381_v24  ;;  %v1813_v24 = vpack.c.bf16 %v262_v10, %v258_v46  ;;  %v303_v38 = vld [vmem:[#allocation5 + $0x5f8] sm:$0xff] }
  0xec   :  { %1724 = vmatprep.subr.bf16.mxu0 %v1723_v13  ;;  %v271_v13 = vld [vmem:[#allocation5 + $0x4f8] sm:$0xff] }
  0xed   :  { %1794 = vmatpush1.bf16.msra.mxu1 %v1793_v19  ;;  %v1815_v14 = vpack.c.bf16 %v271_v13, %v267_v12  ;;  %v1817_v19 = vpack.c.bf16 %v270_v16, %v266_v15  ;;  %v307_v47 = vld [vmem:[#allocation5 + $0x618] sm:$0xff]  ;;  %v314_v12 = vld [vmem:[#allocation5 + $0x650] sm:$0xff] }
  0xee   :  { %1796 = vmatprep.subr.bf16.mxu1 %v1795_v21  ;;  %v274_v21 = vld [vmem:[#allocation5 + $0x510] sm:$0xff]  ;;  %v311_v39 = vld [vmem:[#allocation5 + $0x638] sm:$0xff] }
  0xef   :  { %1726 = vmatpush1.bf16.msra.mxu0 %v1725_v20  ;;  %v1819_v20 = vpack.c.bf16 %v279_v18, %v275_v17  ;;  %v1189_v48 = vld [vmem:[#allocation8 + $0x18] sm:$0xff]  ;;  %v1192_v57 = vld [vmem:[#allocation8 + $0x30] sm:$0xff]  ;;  %v1835_v3 = vpack.c.bf16 %v311_v39, %v307_v47  ;;  %v1198_v17 = vld [vmem:[#allocation8 + $0x60] sm:$0xff] }
  0xf0   :  { %1728 = vmatprep.subr.bf16.mxu0 %v1727_v26  ;;  %v1823_v26 = vpack.c.bf16 %v287_v23, %v283_v22  ;;  %v1193_v53 = vld [vmem:[#allocation8 + $0x38] sm:$0xff]  ;;  %v1941_v2 = vpack.c.bf16 %v1192_v57, %v1190_v56  ;;  %v318_v13 = vld [vmem:[#allocation5 + $0x670] sm:$0xff]  ;;  %v1206_v39 = vld [vmem:[#allocation8 + $0xa0] sm:$0xff] }
  0xf1   :  { %1798 = vmatpush1.bf16.msra.mxu1 %v1797_v33  ;;  %v1827_v33 = vpack.c.bf16 %v295_v30, %v291_v29  ;;  %v1939_v55 = vpack.c.bf16 %v1193_v53, %v1191_v51  ;;  %v1197_v59 = vld [vmem:[#allocation8 + $0x58] sm:$0xff]  ;;  %v1200_v18 = vld [vmem:[#allocation8 + $0x70] sm:$0xff]  ;;  %v1202_v29 = vld [vmem:[#allocation8 + $0x80] sm:$0xff] }
  0xf2   :  { %1800 = vmatprep.subr.bf16.mxu1 %v1799_v36  ;;  %v294_v36 = vld [vmem:[#allocation5 + $0x5b0] sm:$0xff]  ;;  %v315_v4 = vld [vmem:[#allocation5 + $0x658] sm:$0xff]  ;;  %v1943_v5 = vpack.c.bf16 %v1197_v59, %v1195_v58  ;;  %v1210_v57 = vld [vmem:[#allocation8 + $0xc0] sm:$0xff] }
  0xf3   :  { %1730 = vmatpush1.bf16.msra.mxu0 %v1729_v35  ;;  %v290_v35 = vld [vmem:[#allocation5 + $0x590] sm:$0xff]  ;;  %v1201_v46 = vld [vmem:[#allocation8 + $0x78] sm:$0xff] }
  0xf4   :  { %1732 = vmatprep.subr.bf16.mxu0 %v1731_v43  ;;  %v302_v43 = vld [vmem:[#allocation5 + $0x5f0] sm:$0xff]  ;;  %v1829_v45 = vpack.c.bf16 %v294_v36, %v290_v35  ;;  %v323_v15 = vld [vmem:[#allocation5 + $0x698] sm:$0xff] }
  0xf5   :  { %1802 = vmatpush1.bf16.msra.mxu1 %v1801_v49  ;;  %v1186_v49 = vld [vmem:[#allocation8] sm:$0xff]  ;;  %v322_v22 = vld [vmem:[#allocation5 + $0x690] sm:$0xff]  ;;  %v331_v27 = vld [vmem:[#allocation5 + $0x6d8] sm:$0xff] }
  0xf6   :  { %1804 = vmatprep.subr.bf16.mxu1 %v1803_v44  ;;  %v1935_v44 = vpack.c.bf16 %v1189_v48, %v1187_v40  ;;  %v326_v23 = vld [vmem:[#allocation5 + $0x6b0] sm:$0xff]  ;;  %v1209_v35 = vld [vmem:[#allocation8 + $0xb8] sm:$0xff] }
  0xf7   :  { %1734 = vmatpush1.bf16.msra.mxu0 %v1733_v41  ;;  %v1831_v41 = vpack.c.bf16 %v303_v38, %v299_v37  ;;  %v1204_v30 = vld [vmem:[#allocation8 + $0x90] sm:$0xff]  ;;  %v1845_v36 = vpack.c.bf16 %v326_v23, %v322_v22  ;;  %v1225_v22 = vld [vmem:[#allocation8 + $0x138] sm:$0xff] }
  0xf8   :  { %1736 = vmatprep.subr.bf16.mxu0 %v1735_v54  ;;  %963 = vmatmul.mubr.f32.vlgmr.msra.gmra.mrb[2].mxu1 %v2407_v31  ;;  %v2437_v31 = vcombine.low %v587_v6, %v601_v7  ;;  %v1937_v54 = vpack.c.bf16 %v1188_v50, %v1186_v49  ;;  %v1194_v6 = vld [vmem:[#allocation8 + $0x40] sm:$0xff]  ;;  %v1196_v7 = vld [vmem:[#allocation8 + $0x50] sm:$0xff]  ;;  %v1211_v49 = vld [vmem:[#allocation8 + $0xc8] sm:$0xff] }
  0xf9   :  { %1806 = vmatpush1.bf16.msra.mxu1 %v1805_v61  ;;  %1033 = vmatprep.mubr.f32.mxu1 %v2401_v52  ;;  %v278_v52 = vld [vmem:[#allocation5 + $0x530] sm:$0xff]  ;;  %v1833_v61 = vpack.c.bf16 %v302_v43, %v298_v42  ;;  %v1953_v42 = vpack.c.bf16 %v1204_v30, %v1202_v29  ;;  %v343_v48 = vld [vmem:[#allocation5 + $0x738] sm:$0xff] }
  0xfa   :  { %821 = vmatmul.mubr.f32.vlgmr.msra.gmra.mrb[0].mxu0 %v2429_v60  ;;  %1808 = vmatprep.subr.bf16.mxu1 %v1807_v62  ;;  %v1821_v25 = vpack.c.bf16 %v278_v52, %v274_v21  ;;  %v306_v62 = vld [vmem:[#allocation5 + $0x610] sm:$0xff]  ;;  %v1205_v21 = vld [vmem:[#allocation8 + $0x98] sm:$0xff]  ;;  %v1841_v52 = vpack.c.bf16 %v318_v13, %v314_v12 }
  0xfb   :  { %1738 = vmatpush1.bf16.msra.mxu0 %v1737_v63  ;;  %891 = vmatprep.mubr.f32.mxu0 %v2262_v11  ;;  %v310_v63 = vld [vmem:[#allocation5 + $0x630] sm:$0xff]  ;;  %v351_v59 = vld [vmem:[#allocation5 + $0x778] sm:$0xff] }
  0xfc   :  { %1936 = vmatprep.subr.bf16.mxu0 %v1935_v44  ;;  %v1837_v10 = vpack.c.bf16 %v310_v63, %v306_v62  ;;  %v330_v37 = vld [vmem:[#allocation5 + $0x6d0] sm:$0xff]  ;;  %v1217_v62 = vld [vmem:[#allocation8 + $0xf8] sm:$0xff] }
  0xfd   :  { %1810 = vmatpush1.bf16.msra.mxu1 %v1809_v0  ;;  %v319_v0 = vld [vmem:[#allocation5 + $0x678] sm:$0xff]  ;;  %v334_v38 = vld [vmem:[#allocation5 + $0x6f0] sm:$0xff] }
  0xfe   :  { %1812 = vmatprep.subr.bf16.mxu1 %v1811_v1  ;;  %v1199_v1 = vld [vmem:[#allocation8 + $0x68] sm:$0xff]  ;;  %v1208_v40 = vld [vmem:[#allocation8 + $0xb0] sm:$0xff]  ;;  %v1849_v44 = vpack.c.bf16 %v334_v38, %v330_v37  ;;  %v1221_v12 = vld [vmem:[#allocation8 + $0x118] sm:$0xff] }
  0xff   :  { %v1947_v16 = vpack.c.bf16 %v1201_v46, %v1199_v1  ;;  %v338_v50 = vld [vmem:[#allocation5 + $0x710] sm:$0xff]  ;;  %v1957_v53 = vpack.c.bf16 %v1208_v40, %v1206_v39  ;;  %v359_v46 = vld [vmem:[#allocation5 + $0x7b8] sm:$0xff] }
 0x100   :  { %v342_v51 = vld [vmem:[#allocation5 + $0x730] sm:$0xff]  ;;  %v371_v29 = vld [vmem:[#allocation5 + $0x818] sm:$0xff] }
 0x101   :  { %1814 = vmatpush1.bf16.msra.mxu1 %v1813_v24  ;;  %v1945_v24 = vpack.c.bf16 %v1196_v7, %v1194_v6  ;;  %v1212_v58 = vld [vmem:[#allocation8 + $0xd0] sm:$0xff]  ;;  %v1853_v63 = vpack.c.bf16 %v342_v51, %v338_v50  ;;  %v1229_v37 = vld [vmem:[#allocation8 + $0x158] sm:$0xff] }
 0x102   :  { %1540 = vmatmul.mubr.msk.f32.vlgmr.msra.gmra.mrb[0].mxu0 %vm611_vm0, %v2437_v31  ;;  %1816 = vmatprep.subr.bf16.mxu1 %v1815_v14  ;;  %v1839_v14 = vpack.c.bf16 %v319_v0, %v315_v4  ;;  %v1961_v4 = vpack.c.bf16 %v1212_v58, %v1210_v57  ;;  %v355_v6 = vld [vmem:[#allocation5 + $0x798] sm:$0xff]  ;;  %v1214_v0 = vld [vmem:[#allocation8 + $0xe0] sm:$0xff] }
 0x103   :  { %1938 = vmatpush1.bf16.msra.mxu0 %v1937_v54  ;;  %v1216_v1 = vld [vmem:[#allocation8 + $0xf0] sm:$0xff]  ;;  %v1233_v50 = vld [vmem:[#allocation8 + $0x178] sm:$0xff] }
 0x104   :  { %1940 = vmatprep.subr.bf16.mxu0 %v1939_v55  ;;  %v347_v55 = vld [vmem:[#allocation5 + $0x758] sm:$0xff] }
 0x105   :  { %1818 = vmatpush1.bf16.msra.mxu1 %v1817_v19  ;;  %v327_v19 = vld [vmem:[#allocation5 + $0x6b8] sm:$0xff] }
 0x106   :  { %1820 = vmatprep.subr.bf16.mxu1 %v1819_v20  ;;  %v1203_v20 = vld [vmem:[#allocation8 + $0x88] sm:$0xff]  ;;  %v379_v39 = vld [vmem:[#allocation5 + $0x858] sm:$0xff] }
 0x107   :  { %1942 = vmatpush1.bf16.msra.mxu0 %v1941_v2  ;;  %v1951_v28 = vpack.c.bf16 %v1205_v21, %v1203_v20  ;;  %v346_v2 = vld [vmem:[#allocation5 + $0x750] sm:$0xff]  ;;  %v367_v21 = vld [vmem:[#allocation5 + $0x7f8] sm:$0xff] }
 0x108   :  { %1944 = vmatprep.subr.bf16.mxu0 %v1943_v5  ;;  %v1855_v5 = vpack.c.bf16 %v351_v59, %v347_v55  ;;  %v1220_v20 = vld [vmem:[#allocation8 + $0x110] sm:$0xff] }
 0x109   :  { %1822 = vmatpush1.bf16.msra.mxu1 %v1821_v25  ;;  %v1949_v25 = vpack.c.bf16 %v1200_v18, %v1198_v17  ;;  %v363_v17 = vld [vmem:[#allocation5 + $0x7d8] sm:$0xff]  ;;  %v382_v55 = vld [vmem:[#allocation5 + $0x870] sm:$0xff] }
 0x10a   :  { %1824 = vmatprep.subr.bf16.mxu1 %v1823_v26  ;;  %v1843_v26 = vpack.c.bf16 %v327_v19, %v323_v15  ;;  %v1965_v15 = vpack.c.bf16 %v1216_v1, %v1214_v0  ;;  %v1218_v19 = vld [vmem:[#allocation8 + $0x100] sm:$0xff]  ;;  %v391_v58 = vld [vmem:[#allocation5 + $0x8b8] sm:$0xff] }
 0x10b   :  { %1946 = vmatpush1.bf16.msra.mxu0 %v1945_v24  ;;  %v354_v24 = vld [vmem:[#allocation5 + $0x790] sm:$0xff]  ;;  %v399_v1 = vld [vmem:[#allocation5 + $0x8f8] sm:$0xff] }
 0x10c   :  { %1948 = vmatprep.subr.bf16.mxu0 %v1947_v16  ;;  %v1859_v16 = vpack.c.bf16 %v359_v46, %v355_v6  ;;  %v390_v6 = vld [vmem:[#allocation5 + $0x8b0] sm:$0xff] }
 0x10d   :  { %1826 = vmatpush1.bf16.msra.mxu1 %v1825_v32  ;;  %v335_v32 = vld [vmem:[#allocation5 + $0x6f8] sm:$0xff] }
 0x10e   :  { %1828 = vmatprep.subr.bf16.mxu1 %v1827_v33  ;;  %v1207_v33 = vld [vmem:[#allocation8 + $0xa8] sm:$0xff]  ;;  %v1847_v43 = vpack.c.bf16 %v335_v32, %v331_v27  ;;  %v1969_v27 = vpack.c.bf16 %v1220_v20, %v1218_v19  ;;  %v1222_v32 = vld [vmem:[#allocation8 + $0x120] sm:$0xff] }
 0x10f   :  { %1950 = vmatpush1.bf16.msra.mxu0 %v1949_v25  ;;  %v1955_v47 = vpack.c.bf16 %v1209_v35, %v1207_v33  ;;  %v362_v25 = vld [vmem:[#allocation5 + $0x7d0] sm:$0xff]  ;;  %v375_v35 = vld [vmem:[#allocation5 + $0x838] sm:$0xff]  ;;  %v1238_v20 = vld [vmem:[#allocation8 + $0x1a0] sm:$0xff] }
 0x110   :  { %1952 = vmatprep.subr.bf16.mxu0 %v1951_v28  ;;  %v1863_v28 = vpack.c.bf16 %v367_v21, %v363_v17  ;;  %v1224_v33 = vld [vmem:[#allocation8 + $0x130] sm:$0xff] }
 0x111   :  { %1830 = vmatpush1.bf16.msra.mxu1 %v1829_v45  ;;  %v339_v45 = vld [vmem:[#allocation5 + $0x718] sm:$0xff] }
 0x112   :  { %1832 = vmatprep.subr.bf16.mxu1 %v1831_v41  ;;  %v1213_v41 = vld [vmem:[#allocation8 + $0xd8] sm:$0xff]  ;;  %v1851_v54 = vpack.c.bf16 %v343_v48, %v339_v45  ;;  %v370_v45 = vld [vmem:[#allocation5 + $0x810] sm:$0xff] }
 0x113   :  { %1954 = vmatpush1.bf16.msra.mxu0 %v1953_v42  ;;  %v1959_v56 = vpack.c.bf16 %v1213_v41, %v1211_v49  ;;  %v1973_v42 = vpack.c.bf16 %v1224_v33, %v1222_v32  ;;  %v383_v48 = vld [vmem:[#allocation5 + $0x878] sm:$0xff]  ;;  %v1226_v49 = vld [vmem:[#allocation8 + $0x140] sm:$0xff] }
 0x114   :  { %1956 = vmatprep.subr.bf16.mxu0 %v1955_v47  ;;  %v374_v47 = vld [vmem:[#allocation5 + $0x830] sm:$0xff] }
 0x115   :  { %1834 = vmatpush1.bf16.msra.mxu1 %v1833_v61  ;;  %v1215_v61 = vld [vmem:[#allocation8 + $0xe8] sm:$0xff]  ;;  %v1228_v41 = vld [vmem:[#allocation8 + $0x150] sm:$0xff]  ;;  %v1869_v51 = vpack.c.bf16 %v374_v47, %v370_v45 }
 0x116   :  { %1836 = vmatprep.subr.bf16.mxu1 %v1835_v3  ;;  %v350_v3 = vld [vmem:[#allocation5 + $0x770] sm:$0xff]  ;;  %v1963_v7 = vpack.c.bf16 %v1217_v62, %v1215_v61  ;;  %v1977_v57 = vpack.c.bf16 %v1228_v41, %v1226_v49  ;;  %v1230_v61 = vld [vmem:[#allocation8 + $0x160] sm:$0xff] }
 0x117   :  { %1958 = vmatpush1.bf16.msra.mxu0 %v1957_v53  ;;  %v1857_v13 = vpack.c.bf16 %v350_v3, %v346_v2  ;;  %v1871_v53 = vpack.c.bf16 %v383_v48, %v379_v39  ;;  %v1232_v62 = vld [vmem:[#allocation8 + $0x170] sm:$0xff]  ;;  %v1237_v2 = vld [vmem:[#allocation8 + $0x198] sm:$0xff] }
 0x118   :  { %1960 = vmatprep.subr.bf16.mxu0 %v1959_v56  ;;  %v387_v56 = vld [vmem:[#allocation5 + $0x898] sm:$0xff]  ;;  %v1981_v0 = vpack.c.bf16 %v1232_v62, %v1230_v61  ;;  %v418_v47 = vld [vmem:[#allocation5 + $0x990] sm:$0xff] }
 0x119   :  { %1838 = vmatpush1.bf16.msra.mxu1 %v1837_v10  ;;  %v1219_v10 = vld [vmem:[#allocation8 + $0x108] sm:$0xff]  ;;  %v1240_v21 = vld [vmem:[#allocation8 + $0x1b0] sm:$0xff] }
 0x11a   :  { %1840 = vmatprep.subr.bf16.mxu1 %v1839_v14  ;;  %v358_v14 = vld [vmem:[#allocation5 + $0x7b0] sm:$0xff]  ;;  %v1967_v18 = vpack.c.bf16 %v1221_v12, %v1219_v10  ;;  %v1234_v10 = vld [vmem:[#allocation8 + $0x180] sm:$0xff]  ;;  %v431_v48 = vld [vmem:[#allocation5 + $0x9f8] sm:$0xff] }
 0x11b   :  { %1962 = vmatpush1.bf16.msra.mxu0 %v1961_v4  ;;  %v1861_v23 = vpack.c.bf16 %v358_v14, %v354_v24  ;;  %v1875_v4 = vpack.c.bf16 %v391_v58, %v387_v56  ;;  %v1236_v12 = vld [vmem:[#allocation8 + $0x190] sm:$0xff] }
 0x11c   :  { %1964 = vmatprep.subr.bf16.mxu0 %v1963_v7  ;;  %v395_v7 = vld [vmem:[#allocation5 + $0x8d8] sm:$0xff]  ;;  %v1985_v17 = vpack.c.bf16 %v1236_v12, %v1234_v10  ;;  %v422_v39 = vld [vmem:[#allocation5 + $0x9b0] sm:$0xff] }
 0x11d   :  { %1842 = vmatpush1.bf16.msra.mxu1 %v1841_v52  ;;  %v1223_v52 = vld [vmem:[#allocation8 + $0x128] sm:$0xff]  ;;  %v1879_v14 = vpack.c.bf16 %v399_v1, %v395_v7  ;;  %v1893_v49 = vpack.c.bf16 %v422_v39, %v418_v47  ;;  %v1244_v56 = vld [vmem:[#allocation8 + $0x1d0] sm:$0xff] }
 0x11e   :  { %1844 = vmatprep.subr.bf16.mxu1 %v1843_v26  ;;  %v366_v26 = vld [vmem:[#allocation5 + $0x7f0] sm:$0xff]  ;;  %v1971_v30 = vpack.c.bf16 %v1225_v22, %v1223_v52  ;;  %v1245_v22 = vld [vmem:[#allocation8 + $0x1d8] sm:$0xff] }
 0x11f   :  { %1966 = vmatpush1.bf16.msra.mxu0 %v1965_v15  ;;  %v1865_v38 = vpack.c.bf16 %v366_v26, %v362_v25  ;;  %v394_v15 = vld [vmem:[#allocation5 + $0x8d0] sm:$0xff]  ;;  %v443_v62 = vld [vmem:[#allocation5 + $0xa58] sm:$0xff] }
 0x120   :  { %1968 = vmatprep.subr.bf16.mxu0 %v1967_v18  ;;  %v407_v18 = vld [vmem:[#allocation5 + $0x938] sm:$0xff]  ;;  %v1243_v52 = vld [vmem:[#allocation8 + $0x1c8] sm:$0xff] }
 0x121   :  { %1846 = vmatpush1.bf16.msra.mxu1 %v1845_v36  ;;  %v1227_v36 = vld [vmem:[#allocation8 + $0x148] sm:$0xff]  ;;  %v1991_v32 = vpack.c.bf16 %v1245_v22, %v1243_v52  ;;  %v1248_v7 = vld [vmem:[#allocation8 + $0x1f0] sm:$0xff] }
 0x122   :  { %1848 = vmatprep.subr.bf16.mxu1 %v1847_v43  ;;  %v1867_v43 = vpack.c.bf16 %v375_v35, %v371_v29  ;;  %v1975_v40 = vpack.c.bf16 %v1229_v37, %v1227_v36  ;;  %v402_v26 = vld [vmem:[#allocation5 + $0x910] sm:$0xff]  ;;  %v411_v29 = vld [vmem:[#allocation5 + $0x958] sm:$0xff] }
 0x123   :  { %1970 = vmatpush1.bf16.msra.mxu0 %v1969_v27  ;;  %v406_v27 = vld [vmem:[#allocation5 + $0x930] sm:$0xff]  ;;  %v451_v12 = vld [vmem:[#allocation5 + $0xa98] sm:$0xff] }
 0x124   :  { %1972 = vmatprep.subr.bf16.mxu0 %v1971_v30  ;;  %v415_v30 = vld [vmem:[#allocation5 + $0x978] sm:$0xff]  ;;  %v1885_v33 = vpack.c.bf16 %v406_v27, %v402_v26  ;;  %v410_v36 = vld [vmem:[#allocation5 + $0x950] sm:$0xff] }
 0x125   :  { %1850 = vmatpush1.bf16.msra.mxu1 %v1849_v44  ;;  %v1231_v44 = vld [vmem:[#allocation8 + $0x168] sm:$0xff]  ;;  %v1887_v35 = vpack.c.bf16 %v415_v30, %v411_v29  ;;  %v475_v30 = vld [vmem:[#allocation5 + $0xb58] sm:$0xff] }
 0x126   :  { %1852 = vmatprep.subr.bf16.mxu1 %v1851_v54  ;;  %v378_v54 = vld [vmem:[#allocation5 + $0x850] sm:$0xff]  ;;  %v1979_v59 = vpack.c.bf16 %v1233_v50, %v1231_v44 }
 0x127   :  { %1974 = vmatpush1.bf16.msra.mxu0 %v1973_v42  ;;  %v1873_v3 = vpack.c.bf16 %v382_v55, %v378_v54  ;;  %v414_v37 = vld [vmem:[#allocation5 + $0x970] sm:$0xff]  ;;  %v423_v42 = vld [vmem:[#allocation5 + $0x9b8] sm:$0xff]  ;;  %v1242_v55 = vld [vmem:[#allocation8 + $0x1c0] sm:$0xff] }
 0x128   :  { %1976 = vmatprep.subr.bf16.mxu0 %v1975_v40  ;;  %v427_v40 = vld [vmem:[#allocation5 + $0x9d8] sm:$0xff]  ;;  %v426_v44 = vld [vmem:[#allocation5 + $0x9d0] sm:$0xff]  ;;  %v1993_v61 = vpack.c.bf16 %v1244_v56, %v1242_v55 }
 0x129   :  { %1854 = vmatpush1.bf16.msra.mxu1 %v1853_v63  ;;  %v1235_v63 = vld [vmem:[#allocation8 + $0x188] sm:$0xff]  ;;  %v1895_v41 = vpack.c.bf16 %v431_v48, %v427_v40  ;;  %v491_v40 = vld [vmem:[#allocation5 + $0xbd8] sm:$0xff] }
 0x12a   :  { %1856 = vmatprep.subr.bf16.mxu1 %v1855_v5  ;;  %v386_v5 = vld [vmem:[#allocation5 + $0x890] sm:$0xff]  ;;  %v1983_v46 = vpack.c.bf16 %v1237_v2, %v1235_v63  ;;  %v447_v63 = vld [vmem:[#allocation5 + $0xa78] sm:$0xff] }
 0x12b   :  { %1978 = vmatpush1.bf16.msra.mxu0 %v1977_v57  ;;  %v1877_v24 = vpack.c.bf16 %v390_v6, %v386_v5  ;;  %v430_v50 = vld [vmem:[#allocation5 + $0x9f0] sm:$0xff]  ;;  %v1246_v6 = vld [vmem:[#allocation8 + $0x1e0] sm:$0xff]  ;;  %v495_v48 = vld [vmem:[#allocation5 + $0xbf8] sm:$0xff] }
 0x12c   :  { %1980 = vmatprep.subr.bf16.mxu0 %v1979_v59  ;;  %v1897_v54 = vpack.c.bf16 %v430_v50, %v426_v44  ;;  %v434_v58 = vld [vmem:[#allocation5 + $0xa10] sm:$0xff]  ;;  %v1997_v10 = vpack.c.bf16 %v1248_v7, %v1246_v6  ;;  %v1250_v7 = vld [vmem:[#allocation8 + $0x200] sm:$0xff] }
 0x12d   :  { %1858 = vmatpush1.bf16.msra.mxu1 %v1857_v13  ;;  %v1239_v13 = vld [vmem:[#allocation8 + $0x1a8] sm:$0xff] }
 0x12e   :  { %1860 = vmatprep.subr.bf16.mxu1 %v1859_v16  ;;  %v403_v16 = vld [vmem:[#allocation5 + $0x918] sm:$0xff]  ;;  %v438_v59 = vld [vmem:[#allocation5 + $0xa30] sm:$0xff] }
 0x12f   :  { %1982 = vmatpush1.bf16.msra.mxu0 %v1981_v0  ;;  %v1883_v25 = vpack.c.bf16 %v407_v18, %v403_v16  ;;  %v1247_v2 = vld [vmem:[#allocation8 + $0x1e8] sm:$0xff]  ;;  %v1903_v0 = vpack.c.bf16 %v447_v63, %v443_v62  ;;  %v463_v16 = vld [vmem:[#allocation5 + $0xaf8] sm:$0xff]  ;;  %v2448_v62 = vsub.s32 0, %v2378_v8  ;;  %v2450_v63 = vld [vmem:[#allocation7] sm:$0xf] }
 0x130   :  { %1984 = vmatprep.subr.bf16.mxu0 %v1983_v46  ;;  %v442_v1 = vld [vmem:[#allocation5 + $0xa50] sm:$0xff]  ;;  %v1253_v18 = vld [vmem:[#allocation8 + $0x218] sm:$0xff] }
 0x131   :  { %1862 = vmatpush1.bf16.msra.mxu1 %v1861_v23  ;;  %v446_v46 = vld [vmem:[#allocation5 + $0xa70] sm:$0xff] }
 0x132   :  { %1864 = vmatprep.subr.bf16.mxu1 %v1863_v28  ;;  %v1989_v28 = vpack.c.bf16 %v1240_v21, %v1238_v20  ;;  %v458_v52 = vld [vmem:[#allocation5 + $0xad0] sm:$0xff] }
 0x133   :  { %1986 = vmatpush1.bf16.msra.mxu0 %v1985_v17  ;;  %v1251_v17 = vld [vmem:[#allocation8 + $0x208] sm:$0xff] }
 0x134   :  { %v462_v22 = vld [vmem:[#allocation5 + $0xaf0] sm:$0xff] }
 0x135   :  { %1866 = vmatpush1.bf16.msra.mxu1 %v1865_v38  ;;  %v419_v38 = vld [vmem:[#allocation5 + $0x998] sm:$0xff]  ;;  %v1913_v26 = vpack.c.bf16 %v462_v22, %v458_v52  ;;  %v470_v29 = vld [vmem:[#allocation5 + $0xb30] sm:$0xff] }
 0x136   :  { %1868 = vmatprep.subr.bf16.mxu1 %v1867_v43  ;;  %v1889_v43 = vpack.c.bf16 %v414_v37, %v410_v36  ;;  %v1891_v45 = vpack.c.bf16 %v423_v42, %v419_v38  ;;  %v474_v36 = vld [vmem:[#allocation5 + $0xb50] sm:$0xff]  ;;  %v483_v38 = vld [vmem:[#allocation5 + $0xb98] sm:$0xff] }
 0x137   :  { %v478_v37 = vld [vmem:[#allocation5 + $0xb70] sm:$0xff]  ;;  %v487_v42 = vld [vmem:[#allocation5 + $0xbb8] sm:$0xff] }
 0x138   :  { %1034 = vmatmul.mubr.f32.vlgmr.msra.gmra.mrb[2].mxu1 %v2411_v34  ;;  %v1241_v34 = vld [vmem:[#allocation8 + $0x1b8] sm:$0xff]  ;;  %v482_v47 = vld [vmem:[#allocation5 + $0xb90] sm:$0xff] }
 0x139   :  { %1870 = vmatpush1.bf16.msra.mxu1 %v1869_v51  ;;  %1104 = vmatprep.mubr.f32.mxu1 %v2424_v9  ;;  %v398_v9 = vld [vmem:[#allocation5 + $0x8f0] sm:$0xff]  ;;  %v1987_v19 = vpack.c.bf16 %v1241_v34, %v1239_v13  ;;  %v435_v51 = vld [vmem:[#allocation5 + $0xa18] sm:$0xff]  ;;  %v1905_v34 = vpack.c.bf16 %v446_v46, %v442_v1 }
 0x13a   :  { %1872 = vmatprep.subr.bf16.mxu1 %v1871_v53  ;;  %v1881_v23 = vpack.c.bf16 %v398_v9, %v394_v15  ;;  %v439_v53 = vld [vmem:[#allocation5 + $0xa38] sm:$0xff]  ;;  %v454_v15 = vld [vmem:[#allocation5 + $0xab0] sm:$0xff] }
 0x13b   :  { %1988 = vmatprep.subr.bf16.mxu0 %v1987_v19  ;;  %v1899_v57 = vpack.c.bf16 %v439_v53, %v435_v51  ;;  %v455_v13 = vld [vmem:[#allocation5 + $0xab8] sm:$0xff]  ;;  %v1999_v19 = vpack.c.bf16 %v1253_v18, %v1251_v17  ;;  %v486_v39 = vld [vmem:[#allocation5 + $0xbb0] sm:$0xff] }
 0x13c   :  { %1990 = vmatpush1.bf16.msra.mxu0 %v1989_v28  ;;  %v459_v9 = vld [vmem:[#allocation5 + $0xad8] sm:$0xff]  ;;  %v466_v28 = vld [vmem:[#allocation5 + $0xb10] sm:$0xff] }
 0x13d   :  { %1874 = vmatpush1.bf16.msra.mxu1 %v1873_v3  ;;  %1992 = vmatprep.subr.bf16.mxu0 %v1991_v32  ;;  %v1249_v3 = vld [vmem:[#allocation8 + $0x1f8] sm:$0xff]  ;;  %v1911_v21 = vpack.c.bf16 %v463_v16, %v459_v9  ;;  %v490_v44 = vld [vmem:[#allocation5 + $0xbd0] sm:$0xff] }
 0x13e   :  { %1876 = vmatprep.subr.bf16.mxu1 %v1875_v4  ;;  %v1901_v4 = vpack.c.bf16 %v438_v59, %v434_v58  ;;  %v1995_v5 = vpack.c.bf16 %v1249_v3, %v1247_v2  ;;  %v479_v32 = vld [vmem:[#allocation5 + $0xb78] sm:$0xff]  ;;  %v494_v50 = vld [vmem:[#allocation5 + $0xbf0] sm:$0xff]  ;;  %v2453_v2 = vsub.s32 1, %v2378_v8  ;;  %v509_v3 = vrot.slane %v2450_v63, %v2448_v62 }
 0x13f   :  { %v499_v51 = vld [vmem:[#allocation5 + $0xc18] sm:$0xff]  ;;  %v498_v56 = vld [vmem:[#allocation5 + $0xc10] sm:$0xff] }
 0x140   :  { %1994 = vmatpush1.bf16.msra.mxu0 %v1993_v61  ;;  %v503_v53 = vld [vmem:[#allocation5 + $0xc38] sm:$0xff]  ;;  %v1255_v46 = vld [vmem:[#allocation8 + $0x228] sm:$0xff] }
 0x141   :  { %1878 = vmatpush1.bf16.msra.mxu1 %v1877_v24  ;;  %1996 = vmatprep.subr.bf16.mxu0 %v1995_v5  ;;  %v1907_v24 = vpack.c.bf16 %v455_v13, %v451_v12  ;;  %v1931_v55 = vpack.c.bf16 %v503_v53, %v499_v51  ;;  %v1259_v9 = vld [vmem:[#allocation8 + $0x248] sm:$0xff]  ;;  %v1261_v16 = vld [vmem:[#allocation8 + $0x258] sm:$0xff]  ;;  %v1278_v53 = vld [vmem:[#allocation8 + $0x2e0] sm:$0xff] }
 0x142   :  { %1880 = vmatprep.subr.bf16.mxu1 %v1879_v14  ;;  %v450_v14 = vld [vmem:[#allocation5 + $0xa90] sm:$0xff]  ;;  %v2007_v18 = vpack.c.bf16 %v1261_v16, %v1259_v9  ;;  %v1265_v52 = vld [vmem:[#allocation8 + $0x278] sm:$0xff] }
 0x143   :  { %v1909_v20 = vpack.c.bf16 %v454_v15, %v450_v14  ;;  %v1254_v14 = vld [vmem:[#allocation8 + $0x220] sm:$0xff]  ;;  %v1256_v15 = vld [vmem:[#allocation8 + $0x230] sm:$0xff]  ;;  %v1299_v9 = vld [vmem:[#allocation8 + $0x388] sm:$0xff] }
 0x144   :  { %1998 = vmatpush1.bf16.msra.mxu0 %v1997_v10  ;;  %v1257_v10 = vld [vmem:[#allocation8 + $0x238] sm:$0xff]  ;;  %v2005_v17 = vpack.c.bf16 %v1256_v15, %v1254_v14  ;;  %v1294_v14 = vld [vmem:[#allocation8 + $0x360] sm:$0xff]  ;;  %v1296_v15 = vld [vmem:[#allocation8 + $0x370] sm:$0xff] }
 0x145   :  { %1882 = vmatpush1.bf16.msra.mxu1 %v1881_v23  ;;  %2000 = vmatprep.subr.bf16.mxu0 %v1999_v19  ;;  %v467_v23 = vld [vmem:[#allocation5 + $0xb18] sm:$0xff]  ;;  %v1258_v19 = vld [vmem:[#allocation8 + $0x240] sm:$0xff] }
 0x146   :  { %1884 = vmatprep.subr.bf16.mxu1 %v1883_v25  ;;  %v471_v25 = vld [vmem:[#allocation5 + $0xb38] sm:$0xff] }
 0x147   :  { %v1915_v27 = vpack.c.bf16 %v471_v25, %v467_v23  ;;  %v1262_v25 = vld [vmem:[#allocation8 + $0x260] sm:$0xff]  ;;  %v1301_v16 = vld [vmem:[#allocation8 + $0x398] sm:$0xff] }
 0x149   :  { %1886 = vmatpush1.bf16.msra.mxu1 %v1885_v33  ;;  %v1917_v33 = vpack.c.bf16 %v470_v29, %v466_v28  ;;  %v1269_v28 = vld [vmem:[#allocation8 + $0x298] sm:$0xff] }
 0x14a   :  { %1888 = vmatprep.subr.bf16.mxu1 %v1887_v35  ;;  %v1919_v35 = vpack.c.bf16 %v479_v32, %v475_v30  ;;  %v1266_v32 = vld [vmem:[#allocation8 + $0x280] sm:$0xff] }
 0x14d   :  { %1890 = vmatpush1.bf16.msra.mxu1 %v1889_v43  ;;  %v1921_v43 = vpack.c.bf16 %v478_v37, %v474_v36  ;;  %v1273_v36 = vld [vmem:[#allocation8 + $0x2b8] sm:$0xff] }
 0x14e   :  { %1892 = vmatprep.subr.bf16.mxu1 %v1891_v45  ;;  %v1923_v45 = vpack.c.bf16 %v487_v42, %v483_v38  ;;  %v1270_v42 = vld [vmem:[#allocation8 + $0x2a0] sm:$0xff] }
 0x151   :  { %1894 = vmatpush1.bf16.msra.mxu1 %v1893_v49  ;;  %v1925_v49 = vpack.c.bf16 %v486_v39, %v482_v47  ;;  %v1277_v47 = vld [vmem:[#allocation8 + $0x2d8] sm:$0xff] }
 0x152   :  { %1896 = vmatprep.subr.bf16.mxu1 %v1895_v41  ;;  %v1927_v41 = vpack.c.bf16 %v495_v48, %v491_v40  ;;  %v1274_v48 = vld [vmem:[#allocation8 + $0x2c0] sm:$0xff] }
 0x155   :  { %1898 = vmatpush1.bf16.msra.mxu1 %v1897_v54  ;;  %v1929_v54 = vpack.c.bf16 %v494_v50, %v490_v44  ;;  %v1281_v44 = vld [vmem:[#allocation8 + $0x2f8] sm:$0xff] }
 0x156   :  { %1900 = vmatprep.subr.bf16.mxu1 %v1899_v57  ;;  %v502_v57 = vld [vmem:[#allocation5 + $0xc30] sm:$0xff] }
 0x157   :  { %v1933_v58 = vpack.c.bf16 %v502_v57, %v498_v56  ;;  %v1285_v56 = vld [vmem:[#allocation8 + $0x318] sm:$0xff] }
 0x159   :  { %1902 = vmatpush1.bf16.msra.mxu1 %v1901_v4 }
 0x15a   :  { %1904 = vmatprep.subr.bf16.mxu1 %v1903_v0  ;;  %v1252_v0 = vld [vmem:[#allocation8 + $0x210] sm:$0xff] }
 0x15b   :  { %v2001_v13 = vpack.c.bf16 %v1252_v0, %v1250_v7  ;;  %v1293_v7 = vld [vmem:[#allocation8 + $0x358] sm:$0xff] }
 0x15d   :  { %1906 = vmatpush1.bf16.msra.mxu1 %v1905_v34 }
 0x15e   :  { %1908 = vmatprep.subr.bf16.mxu1 %v1907_v24  ;;  %v2003_v24 = vpack.c.bf16 %v1257_v10, %v1255_v46  ;;  %v1290_v46 = vld [vmem:[#allocation8 + $0x340] sm:$0xff]  ;;  %v1292_v10 = vld [vmem:[#allocation8 + $0x350] sm:$0xff] }
 0x161   :  { %1910 = vmatpush1.bf16.msra.mxu1 %v1909_v20  ;;  %v1260_v20 = vld [vmem:[#allocation8 + $0x250] sm:$0xff] }
 0x162   :  { %1912 = vmatprep.subr.bf16.mxu1 %v1911_v21  ;;  %v1263_v21 = vld [vmem:[#allocation8 + $0x268] sm:$0xff]  ;;  %v2009_v22 = vpack.c.bf16 %v1260_v20, %v1258_v19  ;;  %v1298_v19 = vld [vmem:[#allocation8 + $0x380] sm:$0xff]  ;;  %v1300_v20 = vld [vmem:[#allocation8 + $0x390] sm:$0xff] }
 0x163   :  { %v2011_v23 = vpack.c.bf16 %v1265_v52, %v1263_v21  ;;  %v1303_v21 = vld [vmem:[#allocation8 + $0x3a8] sm:$0xff]  ;;  %v1305_v52 = vld [vmem:[#allocation8 + $0x3b8] sm:$0xff] }
 0x165   :  { %1914 = vmatpush1.bf16.msra.mxu1 %v1913_v26  ;;  %v1264_v26 = vld [vmem:[#allocation8 + $0x270] sm:$0xff] }
 0x166   :  { %1916 = vmatprep.subr.bf16.mxu1 %v1915_v27  ;;  %v1267_v27 = vld [vmem:[#allocation8 + $0x288] sm:$0xff]  ;;  %v2013_v29 = vpack.c.bf16 %v1264_v26, %v1262_v25  ;;  %v1302_v25 = vld [vmem:[#allocation8 + $0x3a0] sm:$0xff]  ;;  %v1304_v26 = vld [vmem:[#allocation8 + $0x3b0] sm:$0xff] }
 0x167   :  { %v2015_v30 = vpack.c.bf16 %v1269_v28, %v1267_v27  ;;  %v1307_v27 = vld [vmem:[#allocation8 + $0x3c8] sm:$0xff]  ;;  %v1309_v28 = vld [vmem:[#allocation8 + $0x3d8] sm:$0xff] }
 0x169   :  { %1918 = vmatpush1.bf16.msra.mxu1 %v1917_v33  ;;  %v1268_v33 = vld [vmem:[#allocation8 + $0x290] sm:$0xff] }
 0x16a   :  { %1920 = vmatprep.subr.bf16.mxu1 %v1919_v35  ;;  %v1271_v35 = vld [vmem:[#allocation8 + $0x2a8] sm:$0xff]  ;;  %v2017_v37 = vpack.c.bf16 %v1268_v33, %v1266_v32  ;;  %v1306_v32 = vld [vmem:[#allocation8 + $0x3c0] sm:$0xff]  ;;  %v1308_v33 = vld [vmem:[#allocation8 + $0x3d0] sm:$0xff] }
 0x16b   :  { %v2019_v38 = vpack.c.bf16 %v1273_v36, %v1271_v35  ;;  %v1311_v35 = vld [vmem:[#allocation8 + $0x3e8] sm:$0xff]  ;;  %v1313_v36 = vld [vmem:[#allocation8 + $0x3f8] sm:$0xff] }
 0x16d   :  { %1922 = vmatpush1.bf16.msra.mxu1 %v1921_v43  ;;  %v1272_v43 = vld [vmem:[#allocation8 + $0x2b0] sm:$0xff] }
 0x16e   :  { %1924 = vmatprep.subr.bf16.mxu1 %v1923_v45  ;;  %v1275_v45 = vld [vmem:[#allocation8 + $0x2c8] sm:$0xff]  ;;  %v2021_v39 = vpack.c.bf16 %v1272_v43, %v1270_v42  ;;  %v1310_v42 = vld [vmem:[#allocation8 + $0x3e0] sm:$0xff]  ;;  %v1312_v43 = vld [vmem:[#allocation8 + $0x3f0] sm:$0xff] }
 0x16f   :  { %v2023_v40 = vpack.c.bf16 %v1277_v47, %v1275_v45  ;;  %v2061_v45 = vpack.c.bf16 %v1312_v43, %v1310_v42  ;;  %v516_v47 = vsub.s32 2, %v2378_v8 }
 0x171   :  { %1926 = vmatpush1.bf16.msra.mxu1 %v1925_v49  ;;  %v1276_v49 = vld [vmem:[#allocation8 + $0x2d0] sm:$0xff] }
 0x172   :  { %1928 = vmatprep.subr.bf16.mxu1 %v1927_v41  ;;  %v1279_v41 = vld [vmem:[#allocation8 + $0x2e8] sm:$0xff]  ;;  %v2025_v50 = vpack.c.bf16 %v1276_v49, %v1274_v48 }
 0x173   :  { %v2027_v51 = vpack.c.bf16 %v1281_v44, %v1279_v41 }
 0x175   :  { %1930 = vmatpush1.bf16.msra.mxu1 %v1929_v54  ;;  %v1280_v54 = vld [vmem:[#allocation8 + $0x2f0] sm:$0xff] }
 0x176   :  { %1932 = vmatprep.subr.bf16.mxu1 %v1931_v55  ;;  %v1283_v55 = vld [vmem:[#allocation8 + $0x308] sm:$0xff]  ;;  %v2029_v57 = vpack.c.bf16 %v1280_v54, %v1278_v53  ;;  %v1314_v54 = vld [vmem:[#allocation10] sm:$0x3] }
 0x178   :  { %1105 = vmatmul.mubr.f32.vlgmr.msra.gmra.mrb[2].mxu1 %v2429_v60  ;;  %v513_v60 = vrot.slane %v2450_v63, %v2453_v2 }
 0x179   :  { %1934 = vmatpush1.bf16.msra.mxu1 %v1933_v58  ;;  %1175 = vmatprep.mubr.f32.mxu1 %v2262_v11  ;;  %v2031_v58 = vpack.c.bf16 %v1285_v56, %v1283_v55  ;;  %v1319_v55 = vrot.slane %v1314_v54, %v2448_v62  ;;  %v1323_v56 = vrot.slane %v1314_v54, %v2453_v2 }
 0x180   :  { %1541 = vmatmul.mubr.msk.f32.vlgmr.msra.gmra.mrb[2].mxu1 %vm611_vm0, %v2437_v31 }
 0x18b   :  { %v680_v59 = vpop.f32.mrb[0].mxu1 }
 0x18c   :  { %v682_v61 = vpop.f32.mrb[1].mxu1  ;;  %v681_v11 = vadd.f32 %v680_v59, %v509_v3  ;;  %v1282_v59 = vld [vmem:[#allocation8 + $0x300] sm:$0xff]  ;;  %v1287_v3 = vld [vmem:[#allocation8 + $0x328] sm:$0xff] }
 0x18d   :  { %v683_v4 = vadd.f32 %v682_v61, %v513_v60  ;;  %v1284_v61 = vld [vmem:[#allocation8 + $0x310] sm:$0xff]  ;;  %v1289_v60 = vld [vmem:[#allocation8 + $0x338] sm:$0xff] }
 0x1d5   :  { %v893_v5 = vpop.f32.mrb[0].mxu0 }
 0x1d6   :  { %v2064_v31 = vadd.f32 %v893_v5, %v681_v11  ;;  %v895_v6 = vpop.f32.mrb[1].mxu0  ;;  %v2033_v11 = vpack.c.bf16 %v1284_v61, %v1282_v59  ;;  %v1286_v5 = vld [vmem:[#allocation8 + $0x320] sm:$0xff] }
 0x1d7   :  { %v2066_v1 = vadd.f32 %v895_v6, %v683_v4  ;;  %v2035_v4 = vpack.c.bf16 %v1289_v60, %v1287_v3  ;;  %v1291_v6 = vld [vmem:[#allocation8 + $0x348] sm:$0xff] }
 0x1d8   :  { %v1182_v34 = vmax.f32 %v2064_v31, 0.0  ;;  %v1288_v31 = vld [vmem:[#allocation8 + $0x330] sm:$0xff] }
 0x1d9   :  { %v1183_v12 = vmax.f32 %v2066_v1, 0.0  ;;  %v2037_v0 = vpack.c.bf16 %v1288_v31, %v1286_v5  ;;  %v2039_v1 = vpack.c.bf16 %v1293_v7, %v1291_v6  ;;  %v1542_v6 = vld [vmem:[#allocation2] ss:$0 sm:$0xff] }
 0x1db   :  { %1390 = vmatprep.mubr.f32.mxu0 %v1183_v12  ;;  %v1295_v12 = vld [vmem:[#allocation8 + $0x368] sm:$0xff] }
 0x1dc   :  { %1391 = vmatmul.mubr.f32.vlgmr.msra.gmra.mrb[2].mxu0 %v1182_v34  ;;  %v2041_v34 = vpack.c.bf16 %v1292_v10, %v1290_v46 }
 0x1dd   :  { %2002 = vmatpush1.bf16.msra.mxu0 %v2001_v13  ;;  %v1297_v13 = vld [vmem:[#allocation8 + $0x378] sm:$0xff] }
 0x1de   :  { %2004 = vmatprep.subr.bf16.mxu0 %v2003_v24  ;;  %v2043_v24 = vpack.c.bf16 %v1297_v13, %v1295_v12 }
 0x1e1   :  { %2006 = vmatpush1.bf16.msra.mxu0 %v2005_v17  ;;  %v2045_v17 = vpack.c.bf16 %v1296_v15, %v1294_v14 }
 0x1e2   :  { %2008 = vmatprep.subr.bf16.mxu0 %v2007_v18  ;;  %v2047_v18 = vpack.c.bf16 %v1301_v16, %v1299_v9 }
 0x1e5   :  { %2010 = vmatpush1.bf16.msra.mxu0 %v2009_v22  ;;  %v2049_v22 = vpack.c.bf16 %v1300_v20, %v1298_v19 }
 0x1e6   :  { %2012 = vmatprep.subr.bf16.mxu0 %v2011_v23  ;;  %v2051_v23 = vpack.c.bf16 %v1305_v52, %v1303_v21 }
 0x1e9   :  { %2014 = vmatpush1.bf16.msra.mxu0 %v2013_v29  ;;  %v2053_v29 = vpack.c.bf16 %v1304_v26, %v1302_v25 }
 0x1ea   :  { %2016 = vmatprep.subr.bf16.mxu0 %v2015_v30  ;;  %v2055_v30 = vpack.c.bf16 %v1309_v28, %v1307_v27 }
 0x1ed   :  { %2018 = vmatpush1.bf16.msra.mxu0 %v2017_v37  ;;  %v2057_v37 = vpack.c.bf16 %v1308_v33, %v1306_v32 }
 0x1ee   :  { %2020 = vmatprep.subr.bf16.mxu0 %v2019_v38  ;;  %v2059_v38 = vpack.c.bf16 %v1313_v36, %v1311_v35 }
 0x1f1   :  { %2022 = vmatpush1.bf16.msra.mxu0 %v2021_v39  ;;  %v520_v39 = vsub.s32 3, %v2378_v8 }
 0x1f2   :  { %2024 = vmatprep.subr.bf16.mxu0 %v2023_v40  ;;  %v517_v40 = vrot.slane %v2450_v63, %v516_v47 }
 0x1f3   :  { %v521_v48 = vrot.slane %v2450_v63, %v520_v39 }
 0x1f5   :  { %2026 = vmatpush1.bf16.msra.mxu0 %v2025_v50 }
 0x1f6   :  { %2028 = vmatprep.subr.bf16.mxu0 %v2027_v51 }
 0x1f9   :  { %2030 = vmatpush1.bf16.msra.mxu0 %v2029_v57  ;;  %v1470_v57 = vld [vmem:[#allocation11] sm:$0x3] }
 0x1fa   :  { %2032 = vmatprep.subr.bf16.mxu0 %v2031_v58  ;;  %v1475_v61 = vrot.slane %v1470_v57, %v2448_v62  ;;  %v1479_v3 = vrot.slane %v1470_v57, %v2453_v2 }
 0x1fd   :  { %2034 = vmatpush1.bf16.msra.mxu0 %v2033_v11 }
 0x1fe   :  { %2036 = vmatprep.subr.bf16.mxu0 %v2035_v4 }
 0x201   :  { %2038 = vmatpush1.bf16.msra.mxu0 %v2037_v0 }
 0x202   :  { %2040 = vmatprep.subr.bf16.mxu0 %v2039_v1 }
 0x205   :  { %2042 = vmatpush1.bf16.msra.mxu0 %v2041_v34 }
 0x206   :  { %2044 = vmatprep.subr.bf16.mxu0 %v2043_v24 }
 0x209   :  { %2046 = vmatpush1.bf16.msra.mxu0 %v2045_v17 }
 0x20a   :  { %2048 = vmatprep.subr.bf16.mxu0 %v2047_v18 }
 0x20d   :  { %2050 = vmatpush1.bf16.msra.mxu0 %v2049_v22 }
 0x20e   :  { %2052 = vmatprep.subr.bf16.mxu0 %v2051_v23 }
 0x211   :  { %2054 = vmatpush1.bf16.msra.mxu0 %v2053_v29 }
 0x212   :  { %2056 = vmatprep.subr.bf16.mxu0 %v2055_v30 }
 0x215   :  { %2058 = vmatpush1.bf16.msra.mxu0 %v2057_v37 }
 0x216   :  { %2060 = vmatprep.subr.bf16.mxu0 %v2059_v38 }
 0x219   :  { %2062 = vmatpush1.bf16.msra.mxu0 %v2061_v45 }
 0x253   :  { %v1177_v49 = vpop.f32.mrb[2].mxu1 }
 0x254   :  { %v2067_v41 = vadd.f32 %v1177_v49, %v517_v40  ;;  %v1179_v44 = vpop.f32.mrb[3].mxu1 }
 0x255   :  { %v2068_v50 = vadd.f32 %v1179_v44, %v521_v48 }
 0x256   :  { %v1184_v53 = vmax.f32 %v2067_v41, 0.0 }
 0x257   :  { %v1185_v51 = vmax.f32 %v2068_v50, 0.0 }
 0x259   :  { %1461 = vmatprep.mubr.f32.mxu0 %v1185_v51 }
 0x25a   :  { %1462 = vmatmul.mubr.f32.vlgmr.msra.gmra.mrb[2].mxu0 %v1184_v53 }
 0x32d   :  { %v1463_v58 = vpop.f32.mrb[2].mxu0 }
 0x32e   :  { %v2069_v8 = vadd.f32 %v1463_v58, %v1319_v55  ;;  %v1465_v59 = vpop.f32.mrb[3].mxu0 }
 0x32f   :  { %v2070_v63 = vadd.f32 %v1465_v59, %v1323_v56 }
 0x330   :  { %v1468_v60 = vmax.f32 %v2069_v8, 0.0 }
 0x331   :  { %v1469_v11 = vmax.f32 %v2070_v63, 0.0 }
 0x332   :  { %v1482_v4 = vmul.f32 %v1475_v61, %v1468_v60 }
 0x333   :  { %v1483_v5 = vmul.f32 %v1479_v3, %v1469_v11 }
 0x335   :  { %v1484_v31 = vadd.f32 %v1483_v5, %v1482_v4 }
 0x337   :  { %1485 = vadd.xlane.f32.xlu0 %v1484_v31 }
 0x3c4   :  { %v1486_v7 = vpop.xlane.xlu0 %1485 }
 0x3c5   :  { %v1494_v0 = vadd.f32 %v1542_v6, %v1486_v7 }
 0x3c7   :  { %1496 = vst.msk [vmem:[#allocation13] sm:$0xff] %vm1495_vm1, %v1494_v0 }
 0x3ce   :  { %v1514_v1 = vld [vmem:[#allocation13] sm:$0x3] }
 0x3cf   :  { %1515 = vst [vmem:[%s2477_s7] sm:$0x3] %v1514_v1 }
 0x3d0   :  { %1532 = vsyncpa [#allocation4], 1 }
 0x3d1   :  { %1533 = vsyncpa [#allocation6], 1 }
 0x3d2   :  { %1534 = vsyncpa [#allocation9], 1 }
 0x3d3   :  { %1535 = vsyncpa [#allocation12], 1 }

</bundles_post_ra>
